<compile_context>
chip_gen: v7x
topology: tpu7x:2x2x1
jax: 0.10.0
libtpu: 0.0.40
codegen_flags: <defaults>
</compile_context>

<pallas_src>
import jax
import jax.numpy as jnp
from jax import lax
from jax.experimental import pallas as pl
from jax.experimental.pallas import tpu as pltpu


def _round_up(x: int, m: int) -> int:
    return ((x + m - 1) // m) * m


# ---------------------------------------------------------------------------
# GRU recurrent half (input-to-hidden gates `gi` are precomputed outside the
# recurrence). PyTorch gate convention; bf16 MXU operands, f32 accumulation,
# f32 elementwise math (v5e-safe).
# ---------------------------------------------------------------------------
def _gru_recurrent_step(gi, h, whh, bhh):
    H = whh.shape[0]
    gh = jnp.dot(h.astype(jnp.bfloat16), whh,
                 preferred_element_type=jnp.float32) + bhh                     # (B, 3H)
    r = jax.nn.sigmoid(gi[:, :H] + gh[:, :H])
    z = jax.nn.sigmoid(gi[:, H:2 * H] + gh[:, H:2 * H])
    n = jnp.tanh(gi[:, 2 * H:] + r * gh[:, 2 * H:])
    return (1.0 - z) * n + z * h


# ---------------------------------------------------------------------------
# Encoder kernel: recurrence only (h @ W_hh per step), emits bf16 encoder
# outputs and the final hidden state (selected at each sequence's true length)
# ---------------------------------------------------------------------------
def encoder_kernel(gie_ref, lens_ref, whh_ref, bhh_ref, out_ref, hfin_ref):
    T, B, _ = gie_ref.shape
    H = whh_ref.shape[0]

    # hoist loop-invariant loads
    whh = whh_ref[...]
    bhh = bhh_ref[...]
    lens = lens_ref[...]                       # (B, 1) int32

    def step(t, carry):
        h, h_fin = carry
        gi = gie_ref[t]                        # (B, 3H) f32, precomputed
        h_new = _gru_recurrent_step(gi, h, whh, bhh)
        out_ref[t] = h_new.astype(out_ref.dtype)
        h_fin = jnp.where(lens == t + 1, h_new, h_fin)
        return h_new, h_fin

    unroll = True if T <= 16 else 4
    _, h_fin = lax.fori_loop(
        0, T, step,
        (jnp.zeros((B, H), jnp.float32), jnp.zeros((B, H), jnp.float32)),
        unroll=unroll)
    hfin_ref[...] = h_fin


def run_encoder(gie, lens_col, whh, bhh):
    T, B, G = gie.shape
    H = whh.shape[0]
    BB = B  # one batch block per program (see TODO above for v7x splitting)
    return pl.pallas_call(
        encoder_kernel,
        out_shape=(
            jax.ShapeDtypeStruct((T, B, H), jnp.bfloat16),   # encoder outputs
            jax.ShapeDtypeStruct((B, H), jnp.float32),       # final hidden
        ),
        grid_spec=pltpu.PrefetchScalarGridSpec(
            num_scalar_prefetch=0,
            grid=(pl.cdiv(B, BB),),
            in_specs=[
                pl.BlockSpec((T, BB, G), lambda b: (0, b, 0)),
                pl.BlockSpec((BB, 1), lambda b: (b, 0)),
                pl.BlockSpec((H, G), lambda b: (0, 0)),
                pl.BlockSpec((1, G), lambda b: (0, 0)),
            ],
            out_specs=[
                pl.BlockSpec((T, BB, H), lambda b: (0, b, 0)),
                pl.BlockSpec((BB, H), lambda b: (b, 0)),
            ],
        ),
        compiler_params=pltpu.CompilerParams(
            dimension_semantics=("parallel",)),
    )(gie, lens_col, whh, bhh)


# ---------------------------------------------------------------------------
# Decoder kernel: recurrence + masked MXU attention + combine + log-softmax
# ---------------------------------------------------------------------------
def decoder_kernel(gid_ref, enc_ref, mask_ref, h0_ref,
                   whh_ref, bhh_ref, wcs_ref, wcc_ref, bc_ref, wo_ref, bo_ref,
                   out_ref, attn_ref):
    L = gid_ref.shape[0]

    # hoist loop-invariant loads (enc, mask and every weight read exactly once)
    whh = whh_ref[...]
    bhh = bhh_ref[...]
    wcs = wcs_ref[...]
    wcc = wcc_ref[...]
    bc = bc_ref[...]
    wo = wo_ref[...]
    bo = bo_ref[...]
    enc = enc_ref[...]                          # (B, Tp, H) bf16
    addmask = mask_ref[...]                     # (B, Tp) f32: 0 valid, -1e30 pad

    def step(t, h):
        gi = gid_ref[t]                         # (B, 3H) f32, precomputed
        s = _gru_recurrent_step(gi, h, whh, bhh)                              # (B, H)

        # attention scores / context on the MXU (batched over B)
        scores = lax.dot_general(
            s.astype(jnp.bfloat16), enc,
            dimension_numbers=(((1,), (2,)), ((0,), (0,))),
            preferred_element_type=jnp.float32) + addmask                     # (B, Tp)
        scores = scores - jnp.max(scores, axis=-1, keepdims=True)
        w = jnp.exp(scores)
        attn = w / jnp.sum(w, axis=-1, keepdims=True)                         # exact softmax

        ctx = lax.dot_general(
            attn.astype(jnp.bfloat16), enc,
            dimension_numbers=(((1,), (1,)), ((0,), (0,))),
            preferred_element_type=jnp.float32)                               # (B, H)

        # combine: tanh(s @ Wc_s + ctx @ Wc_c + b_c)  (no concat copy)
        comb = jnp.tanh(
            jnp.dot(s.astype(jnp.bfloat16), wcs, preferred_element_type=jnp.float32)
            + jnp.dot(ctx.astype(jnp.bfloat16), wcc, preferred_element_type=jnp.float32)
            + bc)                                                             # (B, H)

        # output projection + log-softmax (padded classes carry a -1e30 bias)
        logits = jnp.dot(comb.astype(jnp.bfloat16), wo,
                         preferred_element_type=jnp.float32) + bo             # (B, Vp)
        m = jnp.max(logits, axis=-1, keepdims=True)
        lse = jnp.log(jnp.sum(jnp.exp(logits - m), axis=-1, keepdims=True)) + m
        out_ref[t] = logits - lse
        attn_ref[t] = attn
        return s

    unroll = True if L <= 16 else 4
    lax.fori_loop(0, L, step, h0_ref[...], unroll=unroll)


def run_decoder(gid, enc_bth, addmask, h0, whh, bhh, wcs, wcc, bc, wo, bo):
    L, B, G = gid.shape
    _, Tp, H = enc_bth.shape
    Vp = wo.shape[-1]
    BB = B  # one batch block per program (see TODO above for v7x splitting)
    return pl.pallas_call(
        decoder_kernel,
        out_shape=(
            jax.ShapeDtypeStruct((L, B, Vp), jnp.float32),   # log-probs
            jax.ShapeDtypeStruct((L, B, Tp), jnp.float32),   # attention scores
        ),
        grid_spec=pltpu.PrefetchScalarGridSpec(
            num_scalar_prefetch=0,
            grid=(pl.cdiv(B, BB),),
            in_specs=[
                pl.BlockSpec((L, BB, G), lambda b: (0, b, 0)),
                pl.BlockSpec((BB, Tp, H), lambda b: (b, 0, 0)),
                pl.BlockSpec((BB, Tp), lambda b: (b, 0)),
                pl.BlockSpec((BB, H), lambda b: (b, 0)),
                pl.BlockSpec((H, G), lambda b: (0, 0)),
                pl.BlockSpec((1, G), lambda b: (0, 0)),
                pl.BlockSpec((H, H), lambda b: (0, 0)),
                pl.BlockSpec((H, H), lambda b: (0, 0)),
                pl.BlockSpec((1, H), lambda b: (0, 0)),
                pl.BlockSpec((H, Vp), lambda b: (0, 0)),
                pl.BlockSpec((1, Vp), lambda b: (0, 0)),
            ],
            out_specs=[
                pl.BlockSpec((L, BB, Vp), lambda b: (0, b, 0)),
                pl.BlockSpec((L, BB, Tp), lambda b: (0, b, 0)),
            ],
        ),
        compiler_params=pltpu.CompilerParams(
            dimension_semantics=("parallel",)),
    )(gid, enc_bth, addmask, h0, whh, bhh, wcs, wcc, bc, wo, bo)


# ---------------------------------------------------------------------------
# Seq2seq.forward equivalent
# ---------------------------------------------------------------------------
def seq2seq_forward(params, inputs, input_lengths, targets,
                    teacher_forcing_ratio: float = 1.0):
    B, T = inputs.shape
    L = targets.shape[1]
    H = params["enc_whh"].shape[0]
    V = params["wo"].shape[-1]

    # ---- encoder: input-to-hidden gates hoisted out of the recurrence ------
    # One large (T*B,E)x(E,3H) matmul instead of T tiny per-step dots.
    x_emb = jnp.take(params["enc_emb"], inputs.T, axis=0)                    # (T,B,E) f32
    gie = jnp.dot(x_emb.astype(jnp.bfloat16), params["enc_wih"],
                  preferred_element_type=jnp.float32) + params["enc_bih"]    # (T,B,3H) f32

    lens_col = jnp.clip(input_lengths.astype(jnp.int32), 1, T).reshape(B, 1)

    # encoder_outputs, hidden = self.encoder(inputs, input_lengths)
    enc_out, h0 = run_encoder(gie, lens_col, params["enc_whh"], params["enc_bhh"])
    # enc_out: (T,B,H) bf16 ; h0: (B,H) f32 = hidden at each sequence's true length

    # ---- attention memory: (B, Tp, H) bf16 with Tp = round_up(T, 8) --------
    Tp = _round_up(max(T, 1), 8)
    enc_bth = jnp.transpose(enc_out, (1, 0, 2))                              # (B,T,H) bf16
    if Tp != T:
        enc_bth = jnp.pad(enc_bth, ((0, 0), (0, Tp - T), (0, 0)))
    addmask = jnp.where(jnp.arange(Tp)[None, :] < lens_col,
                        0.0, -1e30).astype(jnp.float32)                      # (B,Tp)

    # ---- output projection: lane-dense class axis ---------------------------
    Vp = _round_up(V, 128)
    wo, bo = params["wo"], params["bo"]
    if Vp != V:
        wo = jnp.pad(wo, ((0, 0), (0, Vp - V)))
        bo = jnp.pad(bo, ((0, 0), (0, Vp - V)), constant_values=-1e30)

    # ---- decoder: input-to-hidden gates hoisted (full teacher forcing) -----
    y_emb = jnp.take(params["dec_emb"], targets.T, axis=0)                   # (L,B,E) f32
    gid = jnp.dot(y_emb.astype(jnp.bfloat16), params["dec_wih"],
                  preferred_element_type=jnp.float32) + params["dec_bih"]    # (L,B,3H) f32

    wcs = params["wc"][:H]                                                   # (H,H) bf16
    wcc = params["wc"][H:]                                                   # (H,H) bf16

    # result = self.decoder(targets, encoder_outputs, teacher_forcing_ratio)
    logp_pad, attn_pad = run_decoder(gid, enc_bth, addmask, h0,
                                     params["dec_whh"], params["dec_bhh"],
                                     wcs, wcc, params["bc"], wo, bo)

    logp = logp_pad[..., :V]                                                 # (L, B, V)
    attn = attn_pad[..., :T]                                                 # (L, B, T)
    symbols = jnp.argmax(logp, axis=-1)                                      # (L, B)
    return logp, {"attention_score": attn, "sequence_symbol": symbols}


# ---------------------------------------------------------------------------
# Deterministic parameter construction (weights bf16, biases/embeddings f32)
# ---------------------------------------------------------------------------
def make_params(key, vocab, num_classes, embed, hidden):
    ks = jax.random.split(key, 12)
    s = 0.1

    def w(k, shape):
        return (s * jax.random.normal(k, shape, jnp.float32)).astype(jnp.bfloat16)

    return {
        "enc_emb": s * jax.random.normal(ks[0], (vocab, embed), jnp.float32),
        "enc_wih": w(ks[1], (embed, 3 * hidden)),
        "enc_whh": w(ks[2], (hidden, 3 * hidden)),
        "enc_bih": s * jax.random.normal(ks[3], (1, 3 * hidden), jnp.float32),
        "enc_bhh": s * jax.random.normal(ks[4], (1, 3 * hidden), jnp.float32),
        "dec_emb": s * jax.random.normal(ks[5], (num_classes, embed), jnp.float32),
        "dec_wih": w(ks[6], (embed, 3 * hidden)),
        "dec_whh": w(ks[7], (hidden, 3 * hidden)),
        "dec_bih": s * jax.random.normal(ks[8], (1, 3 * hidden), jnp.float32),
        "dec_bhh": s * jax.random.normal(ks[9], (1, 3 * hidden), jnp.float32),
        "wc": w(ks[10], (2 * hidden, hidden)),   # acts on concat([s, ctx])
        "bc": jnp.zeros((1, hidden), jnp.float32),
        "wo": w(ks[11], (hidden, num_classes)),
        "bo": jnp.zeros((1, num_classes), jnp.float32),
    }


if __name__ == "__main__":
    B, T_ENC, T_DEC = 8, 8, 8
    VOCAB, NUM_CLASSES = 100, 96
    EMBED, HIDDEN = 128, 128

    key = jax.random.PRNGKey(0)
    k_in, k_tgt, k_par = jax.random.split(key, 3)

    inputs = jax.random.randint(k_in, (B, T_ENC), 0, VOCAB, dtype=jnp.int32)
    input_lengths = jnp.array([8, 5, 8, 3, 8, 6, 1, 8], dtype=jnp.int32)
    targets = jax.random.randint(k_tgt, (B, T_DEC), 0, NUM_CLASSES, dtype=jnp.int32)

    params = make_params(k_par, VOCAB, NUM_CLASSES, EMBED, HIDDEN)

    decoder_outputs, ret_dict = seq2seq_forward(
        params, inputs, input_lengths, targets, teacher_forcing_ratio=1.0)

    jax.block_until_ready(decoder_outputs)
    jax.block_until_ready(ret_dict["attention_score"])

    assert decoder_outputs.shape == (T_DEC, B, NUM_CLASSES)
    assert ret_dict["attention_score"].shape == (T_DEC, B, T_ENC)
    assert ret_dict["sequence_symbol"].shape == (T_DEC, B)
    # log-softmax rows must sum to 1 after exp
    assert bool(jnp.allclose(jnp.sum(jnp.exp(decoder_outputs), axis=-1), 1.0,
                             atol=1e-3))
    # attention over valid encoder positions sums to ~1 (exact divide now)
    assert bool(jnp.allclose(jnp.sum(ret_dict["attention_score"], axis=-1), 1.0,
                             atol=1e-3))
    print("KERNEL_OK")
</pallas_src>

<mosaic_0001>
module attributes {stable_mosaic.version = 11 : i64} {
  func.func @encoder_kernel(%arg0: i32, %arg1: memref<8x8x384xf32, #tpu.memory_space<vmem>>, %arg2: memref<8x1xi32, #tpu.memory_space<vmem>>, %arg3: memref<128x384xbf16, #tpu.memory_space<vmem>>, %arg4: memref<1x384xf32, #tpu.memory_space<vmem>>, %arg5: memref<8x8x128xbf16, #tpu.memory_space<vmem>>, %arg6: memref<8x128xf32, #tpu.memory_space<vmem>>) attributes {dimension_semantics = [#tpu.dimension_semantics<parallel>], iteration_bounds = array<i64: 1>, scalar_prefetch = 0 : i64, scratch_operands = 0 : i64, tpu.core_type = #tpu.core_type<tc>, window_params = [{transform_indices = @transform_0, window_bounds = array<i64: 8, 8, 384>}, {transform_indices = @transform_1, window_bounds = array<i64: 8, 1>}, {pipeline_mode = #tpu.pipeline_mode<synchronous>, transform_indices = @transform_2, window_bounds = array<i64: 128, 384>}, {pipeline_mode = #tpu.pipeline_mode<synchronous>, transform_indices = @transform_3, window_bounds = array<i64: 1, 384>}, {transform_indices = @transform_4, window_bounds = array<i64: 8, 8, 128>}, {transform_indices = @transform_5, window_bounds = array<i64: 8, 128>}]} {
    %c0 = arith.constant 0 : index
    %c0_0 = arith.constant 0 : index
    %0 = vector.load %arg3[%c0, %c0_0] : memref<128x384xbf16, #tpu.memory_space<vmem>>, vector<128x384xbf16>
    %c0_1 = arith.constant 0 : index
    %c0_2 = arith.constant 0 : index
    %1 = vector.load %arg4[%c0_1, %c0_2] : memref<1x384xf32, #tpu.memory_space<vmem>>, vector<1x384xf32>
    %c0_3 = arith.constant 0 : index
    %c0_4 = arith.constant 0 : index
    %2 = vector.load %arg2[%c0_3, %c0_4] : memref<8x1xi32, #tpu.memory_space<vmem>>, vector<8x1xi32>
    %cst = arith.constant 0.000000e+00 : f32
    %3 = vector.broadcast %cst : f32 to vector<8x128xf32>
    %cst_5 = arith.constant 0.000000e+00 : f32
    %4 = vector.broadcast %cst_5 : f32 to vector<8x128xf32>
    %c0_i32 = arith.constant 0 : i32
    %5 = arith.index_cast %c0_i32 : i32 to index
    %c0_6 = arith.constant 0 : index
    %c0_7 = arith.constant 0 : index
    %6 = vector.load %arg1[%5, %c0_6, %c0_7] : memref<8x8x384xf32, #tpu.memory_space<vmem>>, vector<1x8x384xf32>
    %7 = vector.shape_cast %6 : vector<1x8x384xf32> to vector<8x384xf32>
    %8 = arith.truncf %3 : vector<8x128xf32> to vector<8x128xbf16>
    %cst_8 = arith.constant dense<0.000000e+00> : vector<8x384xf32>
    %9 = tpu.matmul %8, %0, %cst_8 {dimension_numbers = #tpu.dot_dimension_numbers<[1], [0], [0], [1], [0, 0, 1, 1], [], []>} : vector<8x128xbf16>, vector<128x384xbf16>, vector<8x384xf32> -> vector<8x384xf32>
    %10 = vector.broadcast %1 : vector<1x384xf32> to vector<8x384xf32>
    %11 = arith.addf %9, %10 : vector<8x384xf32>
    %12 = vector.extract_strided_slice %7 {offsets = [0, 0], sizes = [8, 128], strides = [1, 1]} : vector<8x384xf32> to vector<8x128xf32>
    %13 = vector.extract_strided_slice %11 {offsets = [0, 0], sizes = [8, 128], strides = [1, 1]} : vector<8x384xf32> to vector<8x128xf32>
    %14 = arith.addf %12, %13 : vector<8x128xf32>
    %15 = arith.negf %14 : vector<8x128xf32>
    %16 = math.exp %15 : vector<8x128xf32>
    %cst_9 = arith.constant 1.000000e+00 : f32
    %17 = vector.broadcast %cst_9 : f32 to vector<8x128xf32>
    %18 = arith.addf %17, %16 : vector<8x128xf32>
    %19 = arith.divf %17, %18 : vector<8x128xf32>
    %20 = vector.extract_strided_slice %7 {offsets = [0, 128], sizes = [8, 128], strides = [1, 1]} : vector<8x384xf32> to vector<8x128xf32>
    %21 = vector.extract_strided_slice %11 {offsets = [0, 128], sizes = [8, 128], strides = [1, 1]} : vector<8x384xf32> to vector<8x128xf32>
    %22 = arith.addf %20, %21 : vector<8x128xf32>
    %23 = arith.negf %22 : vector<8x128xf32>
    %24 = math.exp %23 : vector<8x128xf32>
    %cst_10 = arith.constant 1.000000e+00 : f32
    %25 = vector.broadcast %cst_10 : f32 to vector<8x128xf32>
    %26 = arith.addf %25, %24 : vector<8x128xf32>
    %27 = arith.divf %25, %26 : vector<8x128xf32>
    %28 = vector.extract_strided_slice %7 {offsets = [0, 256], sizes = [8, 128], strides = [1, 1]} : vector<8x384xf32> to vector<8x128xf32>
    %29 = vector.extract_strided_slice %11 {offsets = [0, 256], sizes = [8, 128], strides = [1, 1]} : vector<8x384xf32> to vector<8x128xf32>
    %30 = arith.mulf %19, %29 : vector<8x128xf32>
    %31 = arith.addf %28, %30 : vector<8x128xf32>
    %32 = math.tanh %31 : vector<8x128xf32>
    %cst_11 = arith.constant 1.000000e+00 : f32
    %33 = vector.broadcast %cst_11 : f32 to vector<8x128xf32>
    %34 = arith.subf %33, %27 : vector<8x128xf32>
    %35 = arith.mulf %34, %32 : vector<8x128xf32>
    %36 = arith.mulf %27, %3 : vector<8x128xf32>
    %37 = arith.addf %35, %36 : vector<8x128xf32>
    %38 = arith.truncf %37 : vector<8x128xf32> to vector<8x128xbf16>
    %39 = arith.index_cast %c0_i32 : i32 to index
    %c0_12 = arith.constant 0 : index
    %c0_13 = arith.constant 0 : index
    %40 = vector.load %arg5[%39, %c0_12, %c0_13] : memref<8x8x128xbf16, #tpu.memory_space<vmem>>, vector<1x8x128xbf16>
    %41 = vector.shape_cast %40 : vector<1x8x128xbf16> to vector<8x128xbf16>
    %42 = vector.shape_cast %38 : vector<8x128xbf16> to vector<1x8x128xbf16>
    tpu.vector_store %arg5[%39, %c0_12, %c0_13], %42 {strides = array<i32>} : memref<8x8x128xbf16, #tpu.memory_space<vmem>>, vector<1x8x128xbf16>,
    %c1_i32 = arith.constant 1 : i32
    %43 = arith.addi %c0_i32, %c1_i32 : i32
    %44 = vector.broadcast %43 : i32 to vector<8x1xi32>
    %45 = arith.cmpi eq, %2, %44 : vector<8x1xi32>
    %46 = vector.shape_cast %45 : vector<8x1xi1> to vector<8x1xi1>
    %47 = vector.broadcast %46 : vector<8x1xi1> to vector<8x128xi1>
    %48 = arith.select %47, %37, %4 : vector<8x128xi1>, vector<8x128xf32>
    %c1_i32_14 = arith.constant 1 : i32
    %49 = arith.index_cast %c1_i32_14 : i32 to index
    %c0_15 = arith.constant 0 : index
    %c0_16 = arith.constant 0 : index
    %50 = vector.load %arg1[%49, %c0_15, %c0_16] : memref<8x8x384xf32, #tpu.memory_space<vmem>>, vector<1x8x384xf32>
    %51 = vector.shape_cast %50 : vector<1x8x384xf32> to vector<8x384xf32>
    %52 = arith.truncf %37 : vector<8x128xf32> to vector<8x128xbf16>
    %cst_17 = arith.constant dense<0.000000e+00> : vector<8x384xf32>
    %53 = tpu.matmul %52, %0, %cst_17 {dimension_numbers = #tpu.dot_dimension_numbers<[1], [0], [0], [1], [0, 0, 1, 1], [], []>} : vector<8x128xbf16>, vector<128x384xbf16>, vector<8x384xf32> -> vector<8x384xf32>
    %54 = vector.broadcast %1 : vector<1x384xf32> to vector<8x384xf32>
    %55 = arith.addf %53, %54 : vector<8x384xf32>
    %56 = vector.extract_strided_slice %51 {offsets = [0, 0], sizes = [8, 128], strides = [1, 1]} : vector<8x384xf32> to vector<8x128xf32>
    %57 = vector.extract_strided_slice %55 {offsets = [0, 0], sizes = [8, 128], strides = [1, 1]} : vector<8x384xf32> to vector<8x128xf32>
    %58 = arith.addf %56, %57 : vector<8x128xf32>
    %59 = arith.negf %58 : vector<8x128xf32>
    %60 = math.exp %59 : vector<8x128xf32>
    %cst_18 = arith.constant 1.000000e+00 : f32
    %61 = vector.broadcast %cst_18 : f32 to vector<8x128xf32>
    %62 = arith.addf %61, %60 : vector<8x128xf32>
    %63 = arith.divf %61, %62 : vector<8x128xf32>
    %64 = vector.extract_strided_slice %51 {offsets = [0, 128], sizes = [8, 128], strides = [1, 1]} : vector<8x384xf32> to vector<8x128xf32>
    %65 = vector.extract_strided_slice %55 {offsets = [0, 128], sizes = [8, 128], strides = [1, 1]} : vector<8x384xf32> to vector<8x128xf32>
    %66 = arith.addf %64, %65 : vector<8x128xf32>
    %67 = arith.negf %66 : vector<8x128xf32>
    %68 = math.exp %67 : vector<8x128xf32>
    %cst_19 = arith.constant 1.000000e+00 : f32
    %69 = vector.broadcast %cst_19 : f32 to vector<8x128xf32>
    %70 = arith.addf %69, %68 : vector<8x128xf32>
    %71 = arith.divf %69, %70 : vector<8x128xf32>
    %72 = vector.extract_strided_slice %51 {offsets = [0, 256], sizes = [8, 128], strides = [1, 1]} : vector<8x384xf32> to vector<8x128xf32>
    %73 = vector.extract_strided_slice %55 {offsets = [0, 256], sizes = [8, 128], strides = [1, 1]} : vector<8x384xf32> to vector<8x128xf32>
    %74 = arith.mulf %63, %73 : vector<8x128xf32>
    %75 = arith.addf %72, %74 : vector<8x128xf32>
    %76 = math.tanh %75 : vector<8x128xf32>
    %cst_20 = arith.constant 1.000000e+00 : f32
    %77 = vector.broadcast %cst_20 : f32 to vector<8x128xf32>
    %78 = arith.subf %77, %71 : vector<8x128xf32>
    %79 = arith.mulf %78, %76 : vector<8x128xf32>
    %80 = arith.mulf %71, %37 : vector<8x128xf32>
    %81 = arith.addf %79, %80 : vector<8x128xf32>
    %82 = arith.truncf %81 : vector<8x128xf32> to vector<8x128xbf16>
    %83 = arith.index_cast %c1_i32_14 : i32 to index
    %c0_21 = arith.constant 0 : index
    %c0_22 = arith.constant 0 : index
    %84 = vector.load %arg5[%83, %c0_21, %c0_22] : memref<8x8x128xbf16, #tpu.memory_space<vmem>>, vector<1x8x128xbf16>
    %85 = vector.shape_cast %84 : vector<1x8x128xbf16> to vector<8x128xbf16>
    %86 = vector.shape_cast %82 : vector<8x128xbf16> to vector<1x8x128xbf16>
    tpu.vector_store %arg5[%83, %c0_21, %c0_22], %86 {strides = array<i32>} : memref<8x8x128xbf16, #tpu.memory_space<vmem>>, vector<1x8x128xbf16>,
    %c1_i32_23 = arith.constant 1 : i32
    %87 = arith.addi %c1_i32_14, %c1_i32_23 : i32
    %88 = vector.broadcast %87 : i32 to vector<8x1xi32>
    %89 = arith.cmpi eq, %2, %88 : vector<8x1xi32>
    %90 = vector.shape_cast %89 : vector<8x1xi1> to vector<8x1xi1>
    %91 = vector.broadcast %90 : vector<8x1xi1> to vector<8x128xi1>
    %92 = arith.select %91, %81, %48 : vector<8x128xi1>, vector<8x128xf32>
    %c2_i32 = arith.constant 2 : i32
    %93 = arith.index_cast %c2_i32 : i32 to index
    %c0_24 = arith.constant 0 : index
    %c0_25 = arith.constant 0 : index
    %94 = vector.load %arg1[%93, %c0_24, %c0_25] : memref<8x8x384xf32, #tpu.memory_space<vmem>>, vector<1x8x384xf32>
    %95 = vector.shape_cast %94 : vector<1x8x384xf32> to vector<8x384xf32>
    %96 = arith.truncf %81 : vector<8x128xf32> to vector<8x128xbf16>
    %cst_26 = arith.constant dense<0.000000e+00> : vector<8x384xf32>
    %97 = tpu.matmul %96, %0, %cst_26 {dimension_numbers = #tpu.dot_dimension_numbers<[1], [0], [0], [1], [0, 0, 1, 1], [], []>} : vector<8x128xbf16>, vector<128x384xbf16>, vector<8x384xf32> -> vector<8x384xf32>
    %98 = vector.broadcast %1 : vector<1x384xf32> to vector<8x384xf32>
    %99 = arith.addf %97, %98 : vector<8x384xf32>
    %100 = vector.extract_strided_slice %95 {offsets = [0, 0], sizes = [8, 128], strides = [1, 1]} : vector<8x384xf32> to vector<8x128xf32>
    %101 = vector.extract_strided_slice %99 {offsets = [0, 0], sizes = [8, 128], strides = [1, 1]} : vector<8x384xf32> to vector<8x128xf32>
    %102 = arith.addf %100, %101 : vector<8x128xf32>
    %103 = arith.negf %102 : vector<8x128xf32>
    %104 = math.exp %103 : vector<8x128xf32>
    %cst_27 = arith.constant 1.000000e+00 : f32
    %105 = vector.broadcast %cst_27 : f32 to vector<8x128xf32>
    %106 = arith.addf %105, %104 : vector<8x128xf32>
    %107 = arith.divf %105, %106 : vector<8x128xf32>
    %108 = vector.extract_strided_slice %95 {offsets = [0, 128], sizes = [8, 128], strides = [1, 1]} : vector<8x384xf32> to vector<8x128xf32>
    %109 = vector.extract_strided_slice %99 {offsets = [0, 128], sizes = [8, 128], strides = [1, 1]} : vector<8x384xf32> to vector<8x128xf32>
    %110 = arith.addf %108, %109 : vector<8x128xf32>
    %111 = arith.negf %110 : vector<8x128xf32>
    %112 = math.exp %111 : vector<8x128xf32>
    %cst_28 = arith.constant 1.000000e+00 : f32
    %113 = vector.broadcast %cst_28 : f32 to vector<8x128xf32>
    %114 = arith.addf %113, %112 : vector<8x128xf32>
    %115 = arith.divf %113, %114 : vector<8x128xf32>
    %116 = vector.extract_strided_slice %95 {offsets = [0, 256], sizes = [8, 128], strides = [1, 1]} : vector<8x384xf32> to vector<8x128xf32>
    %117 = vector.extract_strided_slice %99 {offsets = [0, 256], sizes = [8, 128], strides = [1, 1]} : vector<8x384xf32> to vector<8x128xf32>
    %118 = arith.mulf %107, %117 : vector<8x128xf32>
    %119 = arith.addf %116, %118 : vector<8x128xf32>
    %120 = math.tanh %119 : vector<8x128xf32>
    %cst_29 = arith.constant 1.000000e+00 : f32
    %121 = vector.broadcast %cst_29 : f32 to vector<8x128xf32>
    %122 = arith.subf %121, %115 : vector<8x128xf32>
    %123 = arith.mulf %122, %120 : vector<8x128xf32>
    %124 = arith.mulf %115, %81 : vector<8x128xf32>
    %125 = arith.addf %123, %124 : vector<8x128xf32>
    %126 = arith.truncf %125 : vector<8x128xf32> to vector<8x128xbf16>
    %127 = arith.index_cast %c2_i32 : i32 to index
    %c0_30 = arith.constant 0 : index
    %c0_31 = arith.constant 0 : index
    %128 = vector.load %arg5[%127, %c0_30, %c0_31] : memref<8x8x128xbf16, #tpu.memory_space<vmem>>, vector<1x8x128xbf16>
    %129 = vector.shape_cast %128 : vector<1x8x128xbf16> to vector<8x128xbf16>
    %130 = vector.shape_cast %126 : vector<8x128xbf16> to vector<1x8x128xbf16>
    tpu.vector_store %arg5[%127, %c0_30, %c0_31], %130 {strides = array<i32>} : memref<8x8x128xbf16, #tpu.memory_space<vmem>>, vector<1x8x128xbf16>,
    %c1_i32_32 = arith.constant 1 : i32
    %131 = arith.addi %c2_i32, %c1_i32_32 : i32
    %132 = vector.broadcast %131 : i32 to vector<8x1xi32>
    %133 = arith.cmpi eq, %2, %132 : vector<8x1xi32>
    %134 = vector.shape_cast %133 : vector<8x1xi1> to vector<8x1xi1>
    %135 = vector.broadcast %134 : vector<8x1xi1> to vector<8x128xi1>
    %136 = arith.select %135, %125, %92 : vector<8x128xi1>, vector<8x128xf32>
    %c3_i32 = arith.constant 3 : i32
    %137 = arith.index_cast %c3_i32 : i32 to index
    %c0_33 = arith.constant 0 : index
    %c0_34 = arith.constant 0 : index
    %138 = vector.load %arg1[%137, %c0_33, %c0_34] : memref<8x8x384xf32, #tpu.memory_space<vmem>>, vector<1x8x384xf32>
    %139 = vector.shape_cast %138 : vector<1x8x384xf32> to vector<8x384xf32>
    %140 = arith.truncf %125 : vector<8x128xf32> to vector<8x128xbf16>
    %cst_35 = arith.constant dense<0.000000e+00> : vector<8x384xf32>
    %141 = tpu.matmul %140, %0, %cst_35 {dimension_numbers = #tpu.dot_dimension_numbers<[1], [0], [0], [1], [0, 0, 1, 1], [], []>} : vector<8x128xbf16>, vector<128x384xbf16>, vector<8x384xf32> -> vector<8x384xf32>
    %142 = vector.broadcast %1 : vector<1x384xf32> to vector<8x384xf32>
    %143 = arith.addf %141, %142 : vector<8x384xf32>
    %144 = vector.extract_strided_slice %139 {offsets = [0, 0], sizes = [8, 128], strides = [1, 1]} : vector<8x384xf32> to vector<8x128xf32>
    %145 = vector.extract_strided_slice %143 {offsets = [0, 0], sizes = [8, 128], strides = [1, 1]} : vector<8x384xf32> to vector<8x128xf32>
    %146 = arith.addf %144, %145 : vector<8x128xf32>
    %147 = arith.negf %146 : vector<8x128xf32>
    %148 = math.exp %147 : vector<8x128xf32>
    %cst_36 = arith.constant 1.000000e+00 : f32
    %149 = vector.broadcast %cst_36 : f32 to vector<8x128xf32>
    %150 = arith.addf %149, %148 : vector<8x128xf32>
    %151 = arith.divf %149, %150 : vector<8x128xf32>
    %152 = vector.extract_strided_slice %139 {offsets = [0, 128], sizes = [8, 128], strides = [1, 1]} : vector<8x384xf32> to vector<8x128xf32>
    %153 = vector.extract_strided_slice %143 {offsets = [0, 128], sizes = [8, 128], strides = [1, 1]} : vector<8x384xf32> to vector<8x128xf32>
    %154 = arith.addf %152, %153 : vector<8x128xf32>
    %155 = arith.negf %154 : vector<8x128xf32>
    %156 = math.exp %155 : vector<8x128xf32>
    %cst_37 = arith.constant 1.000000e+00 : f32
    %157 = vector.broadcast %cst_37 : f32 to vector<8x128xf32>
    %158 = arith.addf %157, %156 : vector<8x128xf32>
    %159 = arith.divf %157, %158 : vector<8x128xf32>
    %160 = vector.extract_strided_slice %139 {offsets = [0, 256], sizes = [8, 128], strides = [1, 1]} : vector<8x384xf32> to vector<8x128xf32>
    %161 = vector.extract_strided_slice %143 {offsets = [0, 256], sizes = [8, 128], strides = [1, 1]} : vector<8x384xf32> to vector<8x128xf32>
    %162 = arith.mulf %151, %161 : vector<8x128xf32>
    %163 = arith.addf %160, %162 : vector<8x128xf32>
    %164 = math.tanh %163 : vector<8x128xf32>
    %cst_38 = arith.constant 1.000000e+00 : f32
    %165 = vector.broadcast %cst_38 : f32 to vector<8x128xf32>
    %166 = arith.subf %165, %159 : vector<8x128xf32>
    %167 = arith.mulf %166, %164 : vector<8x128xf32>
    %168 = arith.mulf %159, %125 : vector<8x128xf32>
    %169 = arith.addf %167, %168 : vector<8x128xf32>
    %170 = arith.truncf %169 : vector<8x128xf32> to vector<8x128xbf16>
    %171 = arith.index_cast %c3_i32 : i32 to index
    %c0_39 = arith.constant 0 : index
    %c0_40 = arith.constant 0 : index
    %172 = vector.load %arg5[%171, %c0_39, %c0_40] : memref<8x8x128xbf16, #tpu.memory_space<vmem>>, vector<1x8x128xbf16>
    %173 = vector.shape_cast %172 : vector<1x8x128xbf16> to vector<8x128xbf16>
    %174 = vector.shape_cast %170 : vector<8x128xbf16> to vector<1x8x128xbf16>
    tpu.vector_store %arg5[%171, %c0_39, %c0_40], %174 {strides = array<i32>} : memref<8x8x128xbf16, #tpu.memory_space<vmem>>, vector<1x8x128xbf16>,
    %c1_i32_41 = arith.constant 1 : i32
    %175 = arith.addi %c3_i32, %c1_i32_41 : i32
    %176 = vector.broadcast %175 : i32 to vector<8x1xi32>
    %177 = arith.cmpi eq, %2, %176 : vector<8x1xi32>
    %178 = vector.shape_cast %177 : vector<8x1xi1> to vector<8x1xi1>
    %179 = vector.broadcast %178 : vector<8x1xi1> to vector<8x128xi1>
    %180 = arith.select %179, %169, %136 : vector<8x128xi1>, vector<8x128xf32>
    %c4_i32 = arith.constant 4 : i32
    %181 = arith.index_cast %c4_i32 : i32 to index
    %c0_42 = arith.constant 0 : index
    %c0_43 = arith.constant 0 : index
    %182 = vector.load %arg1[%181, %c0_42, %c0_43] : memref<8x8x384xf32, #tpu.memory_space<vmem>>, vector<1x8x384xf32>
    %183 = vector.shape_cast %182 : vector<1x8x384xf32> to vector<8x384xf32>
    %184 = arith.truncf %169 : vector<8x128xf32> to vector<8x128xbf16>
    %cst_44 = arith.constant dense<0.000000e+00> : vector<8x384xf32>
    %185 = tpu.matmul %184, %0, %cst_44 {dimension_numbers = #tpu.dot_dimension_numbers<[1], [0], [0], [1], [0, 0, 1, 1], [], []>} : vector<8x128xbf16>, vector<128x384xbf16>, vector<8x384xf32> -> vector<8x384xf32>
    %186 = vector.broadcast %1 : vector<1x384xf32> to vector<8x384xf32>
    %187 = arith.addf %185, %186 : vector<8x384xf32>
    %188 = vector.extract_strided_slice %183 {offsets = [0, 0], sizes = [8, 128], strides = [1, 1]} : vector<8x384xf32> to vector<8x128xf32>
    %189 = vector.extract_strided_slice %187 {offsets = [0, 0], sizes = [8, 128], strides = [1, 1]} : vector<8x384xf32> to vector<8x128xf32>
    %190 = arith.addf %188, %189 : vector<8x128xf32>
    %191 = arith.negf %190 : vector<8x128xf32>
    %192 = math.exp %191 : vector<8x128xf32>
    %cst_45 = arith.constant 1.000000e+00 : f32
    %193 = vector.broadcast %cst_45 : f32 to vector<8x128xf32>
    %194 = arith.addf %193, %192 : vector<8x128xf32>
    %195 = arith.divf %193, %194 : vector<8x128xf32>
    %196 = vector.extract_strided_slice %183 {offsets = [0, 128], sizes = [8, 128], strides = [1, 1]} : vector<8x384xf32> to vector<8x128xf32>
    %197 = vector.extract_strided_slice %187 {offsets = [0, 128], sizes = [8, 128], strides = [1, 1]} : vector<8x384xf32> to vector<8x128xf32>
    %198 = arith.addf %196, %197 : vector<8x128xf32>
    %199 = arith.negf %198 : vector<8x128xf32>
    %200 = math.exp %199 : vector<8x128xf32>
    %cst_46 = arith.constant 1.000000e+00 : f32
    %201 = vector.broadcast %cst_46 : f32 to vector<8x128xf32>
    %202 = arith.addf %201, %200 : vector<8x128xf32>
    %203 = arith.divf %201, %202 : vector<8x128xf32>
    %204 = vector.extract_strided_slice %183 {offsets = [0, 256], sizes = [8, 128], strides = [1, 1]} : vector<8x384xf32> to vector<8x128xf32>
    %205 = vector.extract_strided_slice %187 {offsets = [0, 256], sizes = [8, 128], strides = [1, 1]} : vector<8x384xf32> to vector<8x128xf32>
    %206 = arith.mulf %195, %205 : vector<8x128xf32>
    %207 = arith.addf %204, %206 : vector<8x128xf32>
    %208 = math.tanh %207 : vector<8x128xf32>
    %cst_47 = arith.constant 1.000000e+00 : f32
    %209 = vector.broadcast %cst_47 : f32 to vector<8x128xf32>
    %210 = arith.subf %209, %203 : vector<8x128xf32>
    %211 = arith.mulf %210, %208 : vector<8x128xf32>
    %212 = arith.mulf %203, %169 : vector<8x128xf32>
    %213 = arith.addf %211, %212 : vector<8x128xf32>
    %214 = arith.truncf %213 : vector<8x128xf32> to vector<8x128xbf16>
    %215 = arith.index_cast %c4_i32 : i32 to index
    %c0_48 = arith.constant 0 : index
    %c0_49 = arith.constant 0 : index
    %216 = vector.load %arg5[%215, %c0_48, %c0_49] : memref<8x8x128xbf16, #tpu.memory_space<vmem>>, vector<1x8x128xbf16>
    %217 = vector.shape_cast %216 : vector<1x8x128xbf16> to vector<8x128xbf16>
    %218 = vector.shape_cast %214 : vector<8x128xbf16> to vector<1x8x128xbf16>
    tpu.vector_store %arg5[%215, %c0_48, %c0_49], %218 {strides = array<i32>} : memref<8x8x128xbf16, #tpu.memory_space<vmem>>, vector<1x8x128xbf16>,
    %c1_i32_50 = arith.constant 1 : i32
    %219 = arith.addi %c4_i32, %c1_i32_50 : i32
    %220 = vector.broadcast %219 : i32 to vector<8x1xi32>
    %221 = arith.cmpi eq, %2, %220 : vector<8x1xi32>
    %222 = vector.shape_cast %221 : vector<8x1xi1> to vector<8x1xi1>
    %223 = vector.broadcast %222 : vector<8x1xi1> to vector<8x128xi1>
    %224 = arith.select %223, %213, %180 : vector<8x128xi1>, vector<8x128xf32>
    %c5_i32 = arith.constant 5 : i32
    %225 = arith.index_cast %c5_i32 : i32 to index
    %c0_51 = arith.constant 0 : index
    %c0_52 = arith.constant 0 : index
    %226 = vector.load %arg1[%225, %c0_51, %c0_52] : memref<8x8x384xf32, #tpu.memory_space<vmem>>, vector<1x8x384xf32>
    %227 = vector.shape_cast %226 : vector<1x8x384xf32> to vector<8x384xf32>
    %228 = arith.truncf %213 : vector<8x128xf32> to vector<8x128xbf16>
    %cst_53 = arith.constant dense<0.000000e+00> : vector<8x384xf32>
    %229 = tpu.matmul %228, %0, %cst_53 {dimension_numbers = #tpu.dot_dimension_numbers<[1], [0], [0], [1], [0, 0, 1, 1], [], []>} : vector<8x128xbf16>, vector<128x384xbf16>, vector<8x384xf32> -> vector<8x384xf32>
    %230 = vector.broadcast %1 : vector<1x384xf32> to vector<8x384xf32>
    %231 = arith.addf %229, %230 : vector<8x384xf32>
    %232 = vector.extract_strided_slice %227 {offsets = [0, 0], sizes = [8, 128], strides = [1, 1]} : vector<8x384xf32> to vector<8x128xf32>
    %233 = vector.extract_strided_slice %231 {offsets = [0, 0], sizes = [8, 128], strides = [1, 1]} : vector<8x384xf32> to vector<8x128xf32>
    %234 = arith.addf %232, %233 : vector<8x128xf32>
    %235 = arith.negf %234 : vector<8x128xf32>
    %236 = math.exp %235 : vector<8x128xf32>
    %cst_54 = arith.constant 1.000000e+00 : f32
    %237 = vector.broadcast %cst_54 : f32 to vector<8x128xf32>
    %238 = arith.addf %237, %236 : vector<8x128xf32>
    %239 = arith.divf %237, %238 : vector<8x128xf32>
    %240 = vector.extract_strided_slice %227 {offsets = [0, 128], sizes = [8, 128], strides = [1, 1]} : vector<8x384xf32> to vector<8x128xf32>
    %241 = vector.extract_strided_slice %231 {offsets = [0, 128], sizes = [8, 128], strides = [1, 1]} : vector<8x384xf32> to vector<8x128xf32>
    %242 = arith.addf %240, %241 : vector<8x128xf32>
    %243 = arith.negf %242 : vector<8x128xf32>
    %244 = math.exp %243 : vector<8x128xf32>
    %cst_55 = arith.constant 1.000000e+00 : f32
    %245 = vector.broadcast %cst_55 : f32 to vector<8x128xf32>
    %246 = arith.addf %245, %244 : vector<8x128xf32>
    %247 = arith.divf %245, %246 : vector<8x128xf32>
    %248 = vector.extract_strided_slice %227 {offsets = [0, 256], sizes = [8, 128], strides = [1, 1]} : vector<8x384xf32> to vector<8x128xf32>
    %249 = vector.extract_strided_slice %231 {offsets = [0, 256], sizes = [8, 128], strides = [1, 1]} : vector<8x384xf32> to vector<8x128xf32>
    %250 = arith.mulf %239, %249 : vector<8x128xf32>
    %251 = arith.addf %248, %250 : vector<8x128xf32>
    %252 = math.tanh %251 : vector<8x128xf32>
    %cst_56 = arith.constant 1.000000e+00 : f32
    %253 = vector.broadcast %cst_56 : f32 to vector<8x128xf32>
    %254 = arith.subf %253, %247 : vector<8x128xf32>
    %255 = arith.mulf %254, %252 : vector<8x128xf32>
    %256 = arith.mulf %247, %213 : vector<8x128xf32>
    %257 = arith.addf %255, %256 : vector<8x128xf32>
    %258 = arith.truncf %257 : vector<8x128xf32> to vector<8x128xbf16>
    %259 = arith.index_cast %c5_i32 : i32 to index
    %c0_57 = arith.constant 0 : index
    %c0_58 = arith.constant 0 : index
    %260 = vector.load %arg5[%259, %c0_57, %c0_58] : memref<8x8x128xbf16, #tpu.memory_space<vmem>>, vector<1x8x128xbf16>
    %261 = vector.shape_cast %260 : vector<1x8x128xbf16> to vector<8x128xbf16>
    %262 = vector.shape_cast %258 : vector<8x128xbf16> to vector<1x8x128xbf16>
    tpu.vector_store %arg5[%259, %c0_57, %c0_58], %262 {strides = array<i32>} : memref<8x8x128xbf16, #tpu.memory_space<vmem>>, vector<1x8x128xbf16>,
    %c1_i32_59 = arith.constant 1 : i32
    %263 = arith.addi %c5_i32, %c1_i32_59 : i32
    %264 = vector.broadcast %263 : i32 to vector<8x1xi32>
    %265 = arith.cmpi eq, %2, %264 : vector<8x1xi32>
    %266 = vector.shape_cast %265 : vector<8x1xi1> to vector<8x1xi1>
    %267 = vector.broadcast %266 : vector<8x1xi1> to vector<8x128xi1>
    %268 = arith.select %267, %257, %224 : vector<8x128xi1>, vector<8x128xf32>
    %c6_i32 = arith.constant 6 : i32
    %269 = arith.index_cast %c6_i32 : i32 to index
    %c0_60 = arith.constant 0 : index
    %c0_61 = arith.constant 0 : index
    %270 = vector.load %arg1[%269, %c0_60, %c0_61] : memref<8x8x384xf32, #tpu.memory_space<vmem>>, vector<1x8x384xf32>
    %271 = vector.shape_cast %270 : vector<1x8x384xf32> to vector<8x384xf32>
    %272 = arith.truncf %257 : vector<8x128xf32> to vector<8x128xbf16>
    %cst_62 = arith.constant dense<0.000000e+00> : vector<8x384xf32>
    %273 = tpu.matmul %272, %0, %cst_62 {dimension_numbers = #tpu.dot_dimension_numbers<[1], [0], [0], [1], [0, 0, 1, 1], [], []>} : vector<8x128xbf16>, vector<128x384xbf16>, vector<8x384xf32> -> vector<8x384xf32>
    %274 = vector.broadcast %1 : vector<1x384xf32> to vector<8x384xf32>
    %275 = arith.addf %273, %274 : vector<8x384xf32>
    %276 = vector.extract_strided_slice %271 {offsets = [0, 0], sizes = [8, 128], strides = [1, 1]} : vector<8x384xf32> to vector<8x128xf32>
    %277 = vector.extract_strided_slice %275 {offsets = [0, 0], sizes = [8, 128], strides = [1, 1]} : vector<8x384xf32> to vector<8x128xf32>
    %278 = arith.addf %276, %277 : vector<8x128xf32>
    %279 = arith.negf %278 : vector<8x128xf32>
    %280 = math.exp %279 : vector<8x128xf32>
    %cst_63 = arith.constant 1.000000e+00 : f32
    %281 = vector.broadcast %cst_63 : f32 to vector<8x128xf32>
    %282 = arith.addf %281, %280 : vector<8x128xf32>
    %283 = arith.divf %281, %282 : vector<8x128xf32>
    %284 = vector.extract_strided_slice %271 {offsets = [0, 128], sizes = [8, 128], strides = [1, 1]} : vector<8x384xf32> to vector<8x128xf32>
    %285 = vector.extract_strided_slice %275 {offsets = [0, 128], sizes = [8, 128], strides = [1, 1]} : vector<8x384xf32> to vector<8x128xf32>
    %286 = arith.addf %284, %285 : vector<8x128xf32>
    %287 = arith.negf %286 : vector<8x128xf32>
    %288 = math.exp %287 : vector<8x128xf32>
    %cst_64 = arith.constant 1.000000e+00 : f32
    %289 = vector.broadcast %cst_64 : f32 to vector<8x128xf32>
    %290 = arith.addf %289, %288 : vector<8x128xf32>
    %291 = arith.divf %289, %290 : vector<8x128xf32>
    %292 = vector.extract_strided_slice %271 {offsets = [0, 256], sizes = [8, 128], strides = [1, 1]} : vector<8x384xf32> to vector<8x128xf32>
    %293 = vector.extract_strided_slice %275 {offsets = [0, 256], sizes = [8, 128], strides = [1, 1]} : vector<8x384xf32> to vector<8x128xf32>
    %294 = arith.mulf %283, %293 : vector<8x128xf32>
    %295 = arith.addf %292, %294 : vector<8x128xf32>
    %296 = math.tanh %295 : vector<8x128xf32>
    %cst_65 = arith.constant 1.000000e+00 : f32
    %297 = vector.broadcast %cst_65 : f32 to vector<8x128xf32>
    %298 = arith.subf %297, %291 : vector<8x128xf32>
    %299 = arith.mulf %298, %296 : vector<8x128xf32>
    %300 = arith.mulf %291, %257 : vector<8x128xf32>
    %301 = arith.addf %299, %300 : vector<8x128xf32>
    %302 = arith.truncf %301 : vector<8x128xf32> to vector<8x128xbf16>
    %303 = arith.index_cast %c6_i32 : i32 to index
    %c0_66 = arith.constant 0 : index
    %c0_67 = arith.constant 0 : index
    %304 = vector.load %arg5[%303, %c0_66, %c0_67] : memref<8x8x128xbf16, #tpu.memory_space<vmem>>, vector<1x8x128xbf16>
    %305 = vector.shape_cast %304 : vector<1x8x128xbf16> to vector<8x128xbf16>
    %306 = vector.shape_cast %302 : vector<8x128xbf16> to vector<1x8x128xbf16>
    tpu.vector_store %arg5[%303, %c0_66, %c0_67], %306 {strides = array<i32>} : memref<8x8x128xbf16, #tpu.memory_space<vmem>>, vector<1x8x128xbf16>,
    %c1_i32_68 = arith.constant 1 : i32
    %307 = arith.addi %c6_i32, %c1_i32_68 : i32
    %308 = vector.broadcast %307 : i32 to vector<8x1xi32>
    %309 = arith.cmpi eq, %2, %308 : vector<8x1xi32>
    %310 = vector.shape_cast %309 : vector<8x1xi1> to vector<8x1xi1>
    %311 = vector.broadcast %310 : vector<8x1xi1> to vector<8x128xi1>
    %312 = arith.select %311, %301, %268 : vector<8x128xi1>, vector<8x128xf32>
    %c7_i32 = arith.constant 7 : i32
    %313 = arith.index_cast %c7_i32 : i32 to index
    %c0_69 = arith.constant 0 : index
    %c0_70 = arith.constant 0 : index
    %314 = vector.load %arg1[%313, %c0_69, %c0_70] : memref<8x8x384xf32, #tpu.memory_space<vmem>>, vector<1x8x384xf32>
    %315 = vector.shape_cast %314 : vector<1x8x384xf32> to vector<8x384xf32>
    %316 = arith.truncf %301 : vector<8x128xf32> to vector<8x128xbf16>
    %cst_71 = arith.constant dense<0.000000e+00> : vector<8x384xf32>
    %317 = tpu.matmul %316, %0, %cst_71 {dimension_numbers = #tpu.dot_dimension_numbers<[1], [0], [0], [1], [0, 0, 1, 1], [], []>} : vector<8x128xbf16>, vector<128x384xbf16>, vector<8x384xf32> -> vector<8x384xf32>
    %318 = vector.broadcast %1 : vector<1x384xf32> to vector<8x384xf32>
    %319 = arith.addf %317, %318 : vector<8x384xf32>
    %320 = vector.extract_strided_slice %315 {offsets = [0, 0], sizes = [8, 128], strides = [1, 1]} : vector<8x384xf32> to vector<8x128xf32>
    %321 = vector.extract_strided_slice %319 {offsets = [0, 0], sizes = [8, 128], strides = [1, 1]} : vector<8x384xf32> to vector<8x128xf32>
    %322 = arith.addf %320, %321 : vector<8x128xf32>
    %323 = arith.negf %322 : vector<8x128xf32>
    %324 = math.exp %323 : vector<8x128xf32>
    %cst_72 = arith.constant 1.000000e+00 : f32
    %325 = vector.broadcast %cst_72 : f32 to vector<8x128xf32>
    %326 = arith.addf %325, %324 : vector<8x128xf32>
    %327 = arith.divf %325, %326 : vector<8x128xf32>
    %328 = vector.extract_strided_slice %315 {offsets = [0, 128], sizes = [8, 128], strides = [1, 1]} : vector<8x384xf32> to vector<8x128xf32>
    %329 = vector.extract_strided_slice %319 {offsets = [0, 128], sizes = [8, 128], strides = [1, 1]} : vector<8x384xf32> to vector<8x128xf32>
    %330 = arith.addf %328, %329 : vector<8x128xf32>
    %331 = arith.negf %330 : vector<8x128xf32>
    %332 = math.exp %331 : vector<8x128xf32>
    %cst_73 = arith.constant 1.000000e+00 : f32
    %333 = vector.broadcast %cst_73 : f32 to vector<8x128xf32>
    %334 = arith.addf %333, %332 : vector<8x128xf32>
    %335 = arith.divf %333, %334 : vector<8x128xf32>
    %336 = vector.extract_strided_slice %315 {offsets = [0, 256], sizes = [8, 128], strides = [1, 1]} : vector<8x384xf32> to vector<8x128xf32>
    %337 = vector.extract_strided_slice %319 {offsets = [0, 256], sizes = [8, 128], strides = [1, 1]} : vector<8x384xf32> to vector<8x128xf32>
    %338 = arith.mulf %327, %337 : vector<8x128xf32>
    %339 = arith.addf %336, %338 : vector<8x128xf32>
    %340 = math.tanh %339 : vector<8x128xf32>
    %cst_74 = arith.constant 1.000000e+00 : f32
    %341 = vector.broadcast %cst_74 : f32 to vector<8x128xf32>
    %342 = arith.subf %341, %335 : vector<8x128xf32>
    %343 = arith.mulf %342, %340 : vector<8x128xf32>
    %344 = arith.mulf %335, %301 : vector<8x128xf32>
    %345 = arith.addf %343, %344 : vector<8x128xf32>
    %346 = arith.truncf %345 : vector<8x128xf32> to vector<8x128xbf16>
    %347 = arith.index_cast %c7_i32 : i32 to index
    %c0_75 = arith.constant 0 : index
    %c0_76 = arith.constant 0 : index
    %348 = vector.load %arg5[%347, %c0_75, %c0_76] : memref<8x8x128xbf16, #tpu.memory_space<vmem>>, vector<1x8x128xbf16>
    %349 = vector.shape_cast %348 : vector<1x8x128xbf16> to vector<8x128xbf16>
    %350 = vector.shape_cast %346 : vector<8x128xbf16> to vector<1x8x128xbf16>
    tpu.vector_store %arg5[%347, %c0_75, %c0_76], %350 {strides = array<i32>} : memref<8x8x128xbf16, #tpu.memory_space<vmem>>, vector<1x8x128xbf16>,
    %c1_i32_77 = arith.constant 1 : i32
    %351 = arith.addi %c7_i32, %c1_i32_77 : i32
    %352 = vector.broadcast %351 : i32 to vector<8x1xi32>
    %353 = arith.cmpi eq, %2, %352 : vector<8x1xi32>
    %354 = vector.shape_cast %353 : vector<8x1xi1> to vector<8x1xi1>
    %355 = vector.broadcast %354 : vector<8x1xi1> to vector<8x128xi1>
    %356 = arith.select %355, %345, %312 : vector<8x128xi1>, vector<8x128xf32>
    %c8_i32 = arith.constant 8 : i32
    %c0_78 = arith.constant 0 : index
    %c0_79 = arith.constant 0 : index
    %357 = vector.load %arg6[%c0_78, %c0_79] : memref<8x128xf32, #tpu.memory_space<vmem>>, vector<8x128xf32>
    tpu.vector_store %arg6[%c0_78, %c0_79], %356 {strides = array<i32>} : memref<8x128xf32, #tpu.memory_space<vmem>>, vector<8x128xf32>,
    return
  }
  func.func @transform_0(%arg0: i32) -> (i32, i32, i32) {
    %c0_i32 = arith.constant 0 : i32
    %c0_i32_0 = arith.constant 0 : i32
    %c0_i32_1 = arith.constant 0 : i32
    return %c0_i32, %arg0, %c0_i32_0 : i32, i32, i32
  }
  func.func @transform_1(%arg0: i32) -> (i32, i32) {
    %c0_i32 = arith.constant 0 : i32
    %c0_i32_0 = arith.constant 0 : i32
    return %arg0, %c0_i32 : i32, i32
  }
  func.func @transform_2(%arg0: i32) -> (i32, i32) {
    %c0_i32 = arith.constant 0 : i32
    %c0_i32_0 = arith.constant 0 : i32
    %c0_i32_1 = arith.constant 0 : i32
    return %c0_i32, %c0_i32_0 : i32, i32
  }
  func.func @transform_3(%arg0: i32) -> (i32, i32) {
    %c0_i32 = arith.constant 0 : i32
    %c0_i32_0 = arith.constant 0 : i32
    %c0_i32_1 = arith.constant 0 : i32
    return %c0_i32, %c0_i32_0 : i32, i32
  }
  func.func @transform_4(%arg0: i32) -> (i32, i32, i32) {
    %c0_i32 = arith.constant 0 : i32
    %c0_i32_0 = arith.constant 0 : i32
    %c0_i32_1 = arith.constant 0 : i32
    return %c0_i32, %arg0, %c0_i32_0 : i32, i32, i32
  }
  func.func @transform_5(%arg0: i32) -> (i32, i32) {
    %c0_i32 = arith.constant 0 : i32
    %c0_i32_0 = arith.constant 0 : i32
    return %arg0, %c0_i32 : i32, i32
  }
}

</mosaic_0001>

<bundles_post_ra>
// kernel: tpu_custom_call.1
= control target key start
LH: loop header
LB: loop body
LE: loop exit
PB: predicated region body
PF: predicated region fallthrough
CT: control target
= control target key end

     0   :  { %11 = vsyncpa [#allocation3], 0  ;;  %s2211_s0 = inlined_call_operand.hbm [shape: f32[8,8,384], index: 0, kind: input, shape index: {}]   ;;  %s2212_s1 = inlined_call_operand.vmem [shape: s32[8,1], index: 1, kind: input, shape index: {}]   ;;  %s2213_s2 = inlined_call_operand.hbm [shape: bf16[128,384], index: 2, kind: input, shape index: {}]   ;;  %s2214_s3 = inlined_call_operand.vmem [shape: f32[1,384], index: 3, kind: input, shape index: {}]   ;;  %s2215_s4 = inlined_call_operand.hbm [shape: bf16[8,8,128], index: 4, kind: output, shape index: {0}]   ;;  %s2216_s5 = inlined_call_operand.hbm [shape: f32[8,128], index: 5, kind: output, shape index: {1}]  }
   0x1   :  { %12 = vsyncpa [#allocation6], 0 }
   0x2   :  { %13 = vsyncpa [#allocation4], 0 }
   0x3   :  { %14 = vsyncpa [#allocation9], 0  ;;  %s1703_s18 = smov [#allocation2]   ;;  %s1607_s22 = scalar_lea.hbm %s2211_s0, 3072 }
   0x4   :  { %s20_s19 = sshll.u32 %s1703_s18, 4  ;;  %p1608_p0 = scmp.ne.s32.totalorder %s2211_s0, %s1607_s22  ;;  %s21_s19 = int_to_ptr.vmem [resolvable:$true] %s20_s19 }
   0x5   :  { %p1611_p1 = scmp.lt.u32.totalorder %s1607_s22, %s2211_s0 }
   0x7   :  { %p1613_p2 = pnand %p1611_p1, %p1608_p0 }
   0x9   :  { %1616 = shalt.err (!%p1613_p2)
}
   0xa   :  { %s1617_s27 = scalar_lea.vmem %s21_s19, 3072  ;;  %p1622_p4 = scmp.lt.s32.totalorder %s21_s19, %s21_s19 }
   0xb   :  { %p1618_p3 = scmp.ne.s32.totalorder %s21_s19, %s1617_s27  ;;  %p1623_p5 = scmp.lt.s32.totalorder %s1617_s27, %s1617_s27 }
   0xd   :  { %p1624_p6 = por %p1623_p5, %p1622_p4 }
   0xf   :  { %p1625_p7 = pnand %p1624_p6, %p1618_p3 }
  0x11   :  { %1628 = shalt.err (!%p1625_p7)
}
  0x12   :  { %s1704_s28 = smov 384   ;;  %s1705_s29 = smov 24  }
  0x13   :  { %26 = dma.hbm_to_vmem [thread:$0]  %s2211_s0, 3072, %s21_s19, [#allocation3], %s1704_s28, %s1704_s28, %s1705_s29  }
  0x14   :  { %s1706_s7 = smov [#allocation5]   ;;  %s1629_s11 = scalar_lea.hbm %s2213_s2, 3072 }
  0x15   :  { %s34_s8 = sshll.u32 %s1706_s7, 4  ;;  %p1630_p8 = scmp.ne.s32.totalorder %s2213_s2, %s1629_s11  ;;  %s35_s8 = int_to_ptr.vmem [resolvable:$true] %s34_s8 }
  0x16   :  { %p1633_p9 = scmp.lt.u32.totalorder %s1629_s11, %s2213_s2 }
  0x18   :  { %p1635_p10 = pnand %p1633_p9, %p1630_p8 }
  0x1a   :  { %1638 = shalt.err (!%p1635_p10)
}
  0x1b   :  { %s1639_s16 = scalar_lea.vmem %s35_s8, 3072  ;;  %p1644_p12 = scmp.lt.s32.totalorder %s35_s8, %s35_s8 }
  0x1c   :  { %p1640_p11 = scmp.ne.s32.totalorder %s35_s8, %s1639_s16  ;;  %p1645_p13 = scmp.lt.s32.totalorder %s1639_s16, %s1639_s16 }
  0x1e   :  { %p1646_p0 = por %p1645_p13, %p1644_p12 }
  0x20   :  { %p1647_p1 = pnand %p1646_p0, %p1640_p11 }
  0x22   :  { %1650 = shalt.err (!%p1647_p1)
}
  0x23   :  { %s1707_s0 = smov 192   ;;  %s1708_s17 = smov 12  }
  0x24   :  { %40 = dma.hbm_to_vmem [thread:$0]  %s2213_s2, 3072, %s35_s8, [#allocation6], %s1707_s0, %s1707_s0, %s1708_s17  }
  0x25   :  { %1695 = dma.done.wait [#allocation3], 3072  }
  0x26   :  { %1696 = vsyncadd [#allocation3], 4294964224 }
  0x27   :  { %1697 = dma.done.wait [#allocation6], 3072  }
  0x28   :  { %1698 = vsyncadd [#allocation6], 4294964224  ;;  %v1709_v0 = vmov 0.0   ;;  %v1710_v1 = vmov 0   ;;  %vm1711_vm0 = vmmov 0   ;;  %v1820_v16 = vld [vmem:[%s2212_s1] sm:$0xff]  ;;  %v88_v29 = vlaneseq }
  0x29   :  { %1299 = vmatprep.subr.bf16.mxu1 %v1709_v0  ;;  %263 = vmatprep.mubr.bf16.mxu0 %v1710_v1  ;;  %v1776_v2 = vld [vmem:[#allocation5 + $0x4] ss:$12 sps:$4 sm:$0xff]   ;;  %v1778_v3 = vld [vmem:[#allocation5] ss:$12 sps:$4 sm:$0xff]   ;;  %v1781_v4 = vld [vmem:[#allocation5 + $0x1c] ss:$12 sps:$4 sm:$0xff]  }
  0x2a   :  { %1315 = vmatprep.mubr.msk.bf16.mxu1 %vm1711_vm0, %v1709_v0  ;;  %1472 = vset.pattern.permute.xlu0 %v1710_v1  ;;  %v1784_v5 = vld [vmem:[#allocation5 + $0x18] ss:$12 sps:$4 sm:$0xff]   ;;  %v1787_v6 = vld [vmem:[#allocation5 + $0x34] ss:$12 sps:$4 sm:$0xff]   ;;  %v1790_v7 = vld [vmem:[#allocation5 + $0x30] ss:$12 sps:$4 sm:$0xff]  }
  0x2b   :  { %1473 = vset.pattern.permute.xlu1 %v1710_v1  ;;  %231 = vmatprep.subr.bf16.mxu0 %v1776_v2  ;;  %v1793_v8 = vld [vmem:[#allocation5 + $0x4c] ss:$12 sps:$4 sm:$0xff]   ;;  %v1795_v9 = vld [vmem:[#allocation5 + $0x8] ss:$12 sps:$4 sm:$0xff]   ;;  %v1800_v11 = vld [vmem:[#allocation5 + $0x64] ss:$12 sps:$4 sm:$0xff]  }
  0x2c   :  { %232 = vmatpush1.bf16.msra.mxu0 %v1778_v3  ;;  %v1798_v10 = vld [vmem:[#allocation5 + $0x48] ss:$12 sps:$4 sm:$0xff]   ;;  %1300 = vmatpush3.bf16.msra.mxu1 %v1795_v9  ;;  %v1804_v12 = vld [vmem:[#allocation5 + $0x20] ss:$12 sps:$4 sm:$0xff]   ;;  %v1814_v15 = vld [vmem:[#allocation5 + $0x38] ss:$12 sps:$4 sm:$0xff]  }
  0x2d   :  { %233 = vmatprep.subr.bf16.mxu0 %v1781_v4  ;;  %1301 = vmatprep.subr.bf16.mxu1 %v1709_v0  ;;  %v1807_v13 = vld [vmem:[#allocation5 + $0x60] ss:$12 sps:$4 sm:$0xff]   ;;  %v1810_v14 = vld [vmem:[#allocation5 + $0x7c] ss:$12 sps:$4 sm:$0xff]   ;;  %v1823_v17 = vld [vmem:[#allocation5 + $0x78] ss:$12 sps:$4 sm:$0xff]  }
  0x2e   :  { %vm335_vm1 = vcmp.eq.s32.totalorder %v1820_v16, 1  ;;  %v1827_v18 = vld [vmem:[#allocation5 + $0x94] ss:$12 sps:$4 sm:$0xff]   ;;  %v1830_v19 = vld [vmem:[#allocation5 + $0x50] ss:$12 sps:$4 sm:$0xff]   ;;  %vm451_vm2 = vcmp.eq.s32.totalorder %v1820_v16, 2 }
  0x2f   :  { %v336_v20 = vsel %vm335_vm1, 1, %v1710_v1  ;;  %v1835_v21 = vld [vmem:[#allocation5 + $0x90] ss:$12 sps:$4 sm:$0xff]   ;;  %v1838_v22 = vld [vmem:[#allocation5 + $0xac] ss:$12 sps:$4 sm:$0xff]   ;;  %v452_v28 = vsel %vm451_vm2, 1, %v1710_v1 }
  0x30   :  { %234 = vmatpush1.bf16.msra.mxu0 %v1784_v5  ;;  %1302 = vmatpush3.bf16.msra.mxu1 %v1804_v12  ;;  %v1841_v23 = vld [vmem:[#allocation5 + $0x68] ss:$12 sps:$4 sm:$0xff]   ;;  %v1849_v25 = vld [vmem:[#allocation5 + $0x80] ss:$12 sps:$4 sm:$0xff]   ;;  %v1854_v26 = vld [vmem:[#allocation5 + $0x98] ss:$12 sps:$4 sm:$0xff]  }
  0x31   :  { %235 = vmatprep.subr.bf16.mxu0 %v1787_v6  ;;  %1303 = vmatprep.subr.bf16.mxu1 %v1709_v0  ;;  %v1845_v24 = vld [vmem:[#allocation5 + $0xa8] ss:$12 sps:$4 sm:$0xff]   ;;  %v1862_v27 = vld [vmem:[#allocation5 + $0xb0] ss:$12 sps:$4 sm:$0xff]   ;;  %v89_v30 = vshrl.u32 %v88_v29, 7  ;;  %v84_v36 = vld [vmem:[#allocation2] sm:$0xff] }
  0x32   :  { %338 = vperm.xlu0 %1472, %v336_v20   ;;  %v82_v32 = vld [vmem:[%s2214_s3] sm:$0x7]  ;;  %v85_v43 = vld [vmem:[#allocation2 + $0x8] sm:$0xff]  ;;  %v86_v60 = vld [vmem:[#allocation2 + $0x10] sm:$0xff]  ;;  %vm567_vm3 = vcmp.eq.s32.totalorder %v1820_v16, 3  ;;  %vm683_vm4 = vcmp.eq.s32.totalorder %v1820_v16, 4 }
  0x33   :  { %v90_v31 = vsub.s32 0, %v89_v30  ;;  %v94_v33 = vsub.s32 1, %v89_v30  ;;  %v98_v54 = vsub.s32 2, %v89_v30  ;;  %vm799_vm5 = vcmp.eq.s32.totalorder %v1820_v16, 5  ;;  %s1713_s25 = smov [#allocation8]  }
  0x34   :  { %236 = vmatpush1.bf16.msra.mxu0 %v1790_v7  ;;  %1304 = vmatpush3.bf16.msra.mxu1 %v1814_v15  ;;  %vm915_vm6 = vcmp.eq.s32.totalorder %v1820_v16, 6  ;;  %vm1031_vm7 = vcmp.eq.s32.totalorder %v1820_v16, 7  ;;  %s1173_s26 = sshll.u32 %s1713_s25, 4  ;;  %s1174_s26 = int_to_ptr.vmem [resolvable:$true] %s1173_s26 }
  0x35   :  { %237 = vmatprep.subr.bf16.mxu0 %v1793_v8  ;;  %1305 = vmatprep.subr.bf16.mxu1 %v1709_v0  ;;  %v1906_v34 = vrot.slane %v82_v32, %v90_v31  ;;  %v1908_v35 = vrot.slane %v82_v32, %v94_v33  ;;  %v1912_v55 = vrot.slane %v82_v32, %v98_v54  ;;  %v568_v32 = vsel %vm567_vm3, 1, %v1710_v1  ;;  %s1651_s27 = scalar_lea.vmem %s1174_s26, 128  ;;  %p1656_p3 = scmp.lt.s32.totalorder %s1174_s26, %s1174_s26 }
  0x36   :  { %454 = vperm.xlu0 %1472, %v452_v28   ;;  %570 = vperm.xlu1 %1473, %v568_v32   ;;  %v684_v32 = vsel %vm683_vm4, 1, %v1710_v1  ;;  %p1652_p2 = scmp.ne.s32.totalorder %s1174_s26, %s1651_s27  ;;  %p1657_p4 = scmp.lt.s32.totalorder %s1651_s27, %s1651_s27 }
  0x38   :  { %238 = vmatpush1.bf16.msra.mxu0 %v1798_v10  ;;  %1306 = vmatpush3.bf16.msra.mxu1 %v1830_v19  ;;  %p1658_p5 = por %p1657_p4, %p1656_p3 }
  0x39   :  { %239 = vmatprep.subr.bf16.mxu0 %v1800_v11  ;;  %1307 = vmatprep.subr.bf16.mxu1 %v1709_v0 }
  0x3a   :  { %686 = vperm.xlu1 %1473, %v684_v32   ;;  %p1659_p6 = pnand %p1658_p5, %p1652_p2 }
  0x3c   :  { %240 = vmatpush1.bf16.msra.mxu0 %v1807_v13  ;;  %1308 = vmatpush3.bf16.msra.mxu1 %v1841_v23 }
  0x3d   :  { %241 = vmatprep.subr.bf16.mxu0 %v1810_v14  ;;  %1309 = vmatprep.subr.bf16.mxu1 %v1709_v0 }
  0x40   :  { %242 = vmatpush1.bf16.msra.mxu0 %v1823_v17  ;;  %1310 = vmatpush3.bf16.msra.mxu1 %v1849_v25 }
  0x41   :  { %243 = vmatprep.subr.bf16.mxu0 %v1827_v18  ;;  %1311 = vmatprep.subr.bf16.mxu1 %v1709_v0 }
  0x44   :  { %244 = vmatpush1.bf16.msra.mxu0 %v1835_v21  ;;  %1312 = vmatpush3.bf16.msra.mxu1 %v1854_v26 }
  0x45   :  { %245 = vmatprep.subr.bf16.mxu0 %v1838_v22  ;;  %1313 = vmatprep.subr.bf16.mxu1 %v1709_v0 }
  0x48   :  { %246 = vmatpush1.bf16.msra.mxu0 %v1845_v24  ;;  %1314 = vmatpush3.bf16.msra.mxu1 %v1862_v27 }
  0x49   :  { %346 = vmatprep.subr.bf16.mxu0 %v1776_v2  ;;  %1319 = vmatprep.subr.bf16.mxu1 %v1709_v0 }
  0x4b   :  { %264 = vmatmul.mubr.bf16.vlgmr.msra.gmra.mrb[0].mxu0 %v1710_v1  ;;  %1316 = vmatmul.mubr.bf16.vlgmr.msra.gmra.mrb[0].mxu1 %v1710_v1 }
  0x4c   :  { %347 = vmatpush1.bf16.msra.mxu0 %v1778_v3  ;;  %378 = vmatprep.mubr.bf16.mxu0 %v1710_v1 }
  0x4d   :  { %348 = vmatprep.subr.bf16.mxu0 %v1781_v4  ;;  %1320 = vmatpush3.bf16.msra.mxu1 %v1795_v9 }
  0x4e   :  { %1321 = vmatprep.subr.bf16.mxu1 %v1709_v0  ;;  %1335 = vmatprep.mubr.msk.bf16.mxu1 %vm1711_vm0, %v1709_v0 }
  0x50   :  { %349 = vmatpush1.bf16.msra.mxu0 %v1784_v5 }
  0x51   :  { %350 = vmatprep.subr.bf16.mxu0 %v1787_v6  ;;  %1322 = vmatpush3.bf16.msra.mxu1 %v1804_v12 }
  0x52   :  { %1323 = vmatprep.subr.bf16.mxu1 %v1709_v0 }
  0x54   :  { %351 = vmatpush1.bf16.msra.mxu0 %v1790_v7 }
  0x55   :  { %352 = vmatprep.subr.bf16.mxu0 %v1793_v8  ;;  %1324 = vmatpush3.bf16.msra.mxu1 %v1814_v15 }
  0x56   :  { %1325 = vmatprep.subr.bf16.mxu1 %v1709_v0 }
  0x58   :  { %353 = vmatpush1.bf16.msra.mxu0 %v1798_v10 }
  0x59   :  { %354 = vmatprep.subr.bf16.mxu0 %v1800_v11  ;;  %1326 = vmatpush3.bf16.msra.mxu1 %v1830_v19 }
  0x5a   :  { %1327 = vmatprep.subr.bf16.mxu1 %v1709_v0 }
  0x5c   :  { %355 = vmatpush1.bf16.msra.mxu0 %v1807_v13 }
  0x5d   :  { %356 = vmatprep.subr.bf16.mxu0 %v1810_v14  ;;  %1328 = vmatpush3.bf16.msra.mxu1 %v1841_v23 }
  0x5e   :  { %1329 = vmatprep.subr.bf16.mxu1 %v1709_v0 }
  0x60   :  { %357 = vmatpush1.bf16.msra.mxu0 %v1823_v17 }
  0x61   :  { %358 = vmatprep.subr.bf16.mxu0 %v1827_v18  ;;  %1330 = vmatpush3.bf16.msra.mxu1 %v1849_v25 }
  0x62   :  { %1331 = vmatprep.subr.bf16.mxu1 %v1709_v0 }
  0x64   :  { %359 = vmatpush1.bf16.msra.mxu0 %v1835_v21 }
  0x65   :  { %360 = vmatprep.subr.bf16.mxu0 %v1838_v22  ;;  %1332 = vmatpush3.bf16.msra.mxu1 %v1854_v26 }
  0x66   :  { %1333 = vmatprep.subr.bf16.mxu1 %v1709_v0 }
  0x68   :  { %361 = vmatpush1.bf16.msra.mxu0 %v1845_v24 }
  0x69   :  { %462 = vmatprep.subr.bf16.mxu0 %v1776_v2  ;;  %1334 = vmatpush3.bf16.msra.mxu1 %v1862_v27 }
  0x6a   :  { %1339 = vmatprep.subr.bf16.mxu1 %v1709_v0 }
 0x11e   :  { %v265_v37 = vpop.f32.mrb[0].mxu0  ;;  %v306_v47 = vpop.f32.mrb[0].mxu1 }
 0x11f   :  { %v266_v38 = vadd.f32 %v265_v37, %v1906_v34  ;;  %v267_v39 = vpop.f32.mrb[1].mxu0  ;;  %v1317_v49 = vpop.f32.mrb[1].mxu1  ;;  %v307_v58 = vadd.f32 %v306_v47, %v1912_v55 }
 0x120   :  { %v268_v40 = vadd.f32 %v267_v39, %v1908_v35  ;;  %v269_v41 = vpop.f32.mrb[2].mxu0  ;;  %v309_v50 = vpop.f32.mrb[2].mxu1 }
 0x121   :  { %v312_v42 = vadd.f32 %v266_v38, %v84_v36  ;;  %v270_v44 = vpop.f32.mrb[3].mxu0  ;;  %v1318_v51 = vpop.f32.mrb[3].mxu1  ;;  %v343_v36 = vld [vmem:[#allocation2 + $0x18] sm:$0xff] }
 0x122   :  { %v319_v46 = vadd.f32 %v268_v40, %v85_v43 }
 0x123   :  { %v1211_v45 = vmul.f32 -1.442695, %v312_v42 }
 0x124   :  { %v1212_v48 = vmul.f32 -1.442695, %v319_v46  ;;  %v344_v46 = vld [vmem:[#allocation2 + $0x20] sm:$0xff] }
 0x125   :  { %1506 = vpow2.f32 %v1211_v45 }
 0x126   :  { %1508 = vpow2.f32 %v1212_v48 }
 0x12f   :  { %v1507_v52 = vpop.eup %1506 }
 0x130   :  { %v316_v53 = vadd.f32 1.0, %v1507_v52  ;;  %v1509_v56 = vpop.eup %1508 }
 0x131   :  { %v323_v57 = vadd.f32 1.0, %v1509_v56 }
 0x132   :  { %1510 = vrcp.f32 %v316_v53 }
 0x133   :  { %1512 = vrcp.f32 %v323_v57 }
 0x13c   :  { %v1511_v59 = vpop.eup %1510 }
 0x13d   :  { %v326_v61 = vmul.f32 %v1511_v59, %v307_v58  ;;  %v1513_v63 = vpop.eup %1512  ;;  %v345_v59 = vld [vmem:[#allocation2 + $0x28] sm:$0xff] }
 0x13e   :  { %v329_v20 = vsub.f32 1.0, %v1513_v63  ;;  %v331_v31 = vmul.f32 0.0, %v1513_v63 }
 0x13f   :  { %v327_v62 = vadd.f32 %v326_v61, %v86_v60 }
 0x141   :  { %1514 = vtanh.f32 %v327_v62 }
 0x14b   :  { %v1515_v28 = vpop.eup %1514 }
 0x14c   :  { %v330_v29 = vmul.f32 %v1515_v28, %v329_v20 }
 0x14e   :  { %v1915_v33 = vadd.f32 %v331_v31, %v330_v29 }
 0x150   :  { %v333_v30 = vpack.c.bf16 %v1915_v33, %v1915_v33 }
 0x152   :  { %334 = vst [vmem:[#allocation7] sm:$0xf] %v333_v30  ;;  %379 = vmatmul.mubr.bf16.vlgmr.msra.gmra.mrb[4].mxu0 %v333_v30  ;;  %1336 = vmatmul.mubr.bf16.vlgmr.msra.gmra.mrb[4].mxu1 %v333_v30 }
 0x153   :  { %463 = vmatpush1.bf16.msra.mxu0 %v1778_v3  ;;  %1340 = vmatpush3.bf16.msra.mxu1 %v1795_v9 }
 0x154   :  { %464 = vmatprep.subr.bf16.mxu0 %v1781_v4  ;;  %1341 = vmatprep.subr.bf16.mxu1 %v1709_v0 }
 0x155   :  { %494 = vmatprep.mubr.bf16.mxu0 %v1710_v1  ;;  %1355 = vmatprep.mubr.msk.bf16.mxu1 %vm1711_vm0, %v1709_v0 }
 0x157   :  { %465 = vmatpush1.bf16.msra.mxu0 %v1784_v5  ;;  %1342 = vmatpush3.bf16.msra.mxu1 %v1804_v12 }
 0x158   :  { %466 = vmatprep.subr.bf16.mxu0 %v1787_v6  ;;  %1343 = vmatprep.subr.bf16.mxu1 %v1709_v0 }
 0x15b   :  { %467 = vmatpush1.bf16.msra.mxu0 %v1790_v7  ;;  %1344 = vmatpush3.bf16.msra.mxu1 %v1814_v15 }
 0x15c   :  { %468 = vmatprep.subr.bf16.mxu0 %v1793_v8  ;;  %1345 = vmatprep.subr.bf16.mxu1 %v1709_v0 }
 0x15f   :  { %469 = vmatpush1.bf16.msra.mxu0 %v1798_v10  ;;  %1346 = vmatpush3.bf16.msra.mxu1 %v1830_v19 }
 0x160   :  { %470 = vmatprep.subr.bf16.mxu0 %v1800_v11  ;;  %1347 = vmatprep.subr.bf16.mxu1 %v1709_v0 }
 0x163   :  { %471 = vmatpush1.bf16.msra.mxu0 %v1807_v13  ;;  %1348 = vmatpush3.bf16.msra.mxu1 %v1841_v23 }
 0x164   :  { %472 = vmatprep.subr.bf16.mxu0 %v1810_v14  ;;  %1349 = vmatprep.subr.bf16.mxu1 %v1709_v0 }
 0x167   :  { %473 = vmatpush1.bf16.msra.mxu0 %v1823_v17  ;;  %1350 = vmatpush3.bf16.msra.mxu1 %v1849_v25 }
 0x168   :  { %474 = vmatprep.subr.bf16.mxu0 %v1827_v18  ;;  %1351 = vmatprep.subr.bf16.mxu1 %v1709_v0 }
 0x16b   :  { %475 = vmatpush1.bf16.msra.mxu0 %v1835_v21  ;;  %1352 = vmatpush3.bf16.msra.mxu1 %v1854_v26 }
 0x16c   :  { %476 = vmatprep.subr.bf16.mxu0 %v1838_v22  ;;  %1353 = vmatprep.subr.bf16.mxu1 %v1709_v0 }
 0x16f   :  { %477 = vmatpush1.bf16.msra.mxu0 %v1845_v24  ;;  %1354 = vmatpush3.bf16.msra.mxu1 %v1862_v27 }
 0x170   :  { %578 = vmatprep.subr.bf16.mxu0 %v1776_v2  ;;  %1359 = vmatprep.subr.bf16.mxu1 %v1709_v0 }
 0x225   :  { %v380_v37 = vpop.f32.mrb[4].mxu0  ;;  %v421_v38 = vpop.f32.mrb[4].mxu1 }
 0x226   :  { %v381_v39 = vadd.f32 %v380_v37, %v1906_v34  ;;  %v382_v40 = vpop.f32.mrb[5].mxu0  ;;  %v1337_v41 = vpop.f32.mrb[5].mxu1  ;;  %v422_v57 = vadd.f32 %v421_v38, %v1912_v55 }
 0x227   :  { %v383_v42 = vadd.f32 %v382_v40, %v1908_v35  ;;  %v384_v43 = vpop.f32.mrb[6].mxu0  ;;  %v424_v44 = vpop.f32.mrb[6].mxu1 }
 0x228   :  { %v427_v45 = vadd.f32 %v381_v39, %v343_v36  ;;  %v385_v47 = vpop.f32.mrb[7].mxu0  ;;  %v1338_v48 = vpop.f32.mrb[7].mxu1  ;;  %v459_v36 = vld [vmem:[#allocation2 + $0x30] sm:$0xff] }
 0x229   :  { %v434_v50 = vadd.f32 %v383_v42, %v344_v46  ;;  %v460_v46 = vld [vmem:[#allocation2 + $0x38] sm:$0xff] }
 0x22a   :  { %v1213_v49 = vmul.f32 -1.442695, %v427_v45 }
 0x22b   :  { %v1214_v51 = vmul.f32 -1.442695, %v434_v50 }
 0x22c   :  { %1516 = vpow2.f32 %v1213_v49 }
 0x22d   :  { %1518 = vpow2.f32 %v1214_v51 }
 0x236   :  { %v1517_v52 = vpop.eup %1516 }
 0x237   :  { %v431_v53 = vadd.f32 1.0, %v1517_v52  ;;  %v1519_v54 = vpop.eup %1518 }
 0x238   :  { %v438_v56 = vadd.f32 1.0, %v1519_v54 }
 0x239   :  { %1520 = vrcp.f32 %v431_v53 }
 0x23a   :  { %1522 = vrcp.f32 %v438_v56 }
 0x243   :  { %v1521_v58 = vpop.eup %1520 }
 0x244   :  { %v441_v60 = vmul.f32 %v1521_v58, %v422_v57  ;;  %v1523_v62 = vpop.eup %1522 }
 0x245   :  { %v444_v63 = vsub.f32 1.0, %v1523_v62  ;;  %v446_v29 = vmul.f32 %v1523_v62, %v1915_v33 }
 0x246   :  { %v442_v61 = vadd.f32 %v441_v60, %v345_v59  ;;  %v461_v59 = vld [vmem:[#allocation2 + $0x40] sm:$0xff] }
 0x248   :  { %1524 = vtanh.f32 %v442_v61 }
 0x252   :  { %v1525_v20 = vpop.eup %1524 }
 0x253   :  { %v445_v28 = vmul.f32 %v1525_v20, %v444_v63 }
 0x255   :  { %v1960_v31 = vadd.f32 %v446_v29, %v445_v28 }
 0x257   :  { %v448_v30 = vpack.c.bf16 %v1960_v31, %v1960_v31 }
 0x259   :  { %450 = vst [vmem:[#allocation7 + $0x4] sm:$0xf] %v448_v30  ;;  %495 = vmatmul.mubr.bf16.vlgmr.msra.gmra.mrb[8].mxu0 %v448_v30  ;;  %1356 = vmatmul.mubr.bf16.vlgmr.msra.gmra.mrb[8].mxu1 %v448_v30 }
 0x25a   :  { %579 = vmatpush1.bf16.msra.mxu0 %v1778_v3  ;;  %1360 = vmatpush3.bf16.msra.mxu1 %v1795_v9 }
 0x25b   :  { %580 = vmatprep.subr.bf16.mxu0 %v1781_v4  ;;  %1361 = vmatprep.subr.bf16.mxu1 %v1709_v0 }
 0x25c   :  { %610 = vmatprep.mubr.bf16.mxu0 %v1710_v1  ;;  %1375 = vmatprep.mubr.msk.bf16.mxu1 %vm1711_vm0, %v1709_v0 }
 0x25e   :  { %581 = vmatpush1.bf16.msra.mxu0 %v1784_v5  ;;  %1362 = vmatpush3.bf16.msra.mxu1 %v1804_v12 }
 0x25f   :  { %582 = vmatprep.subr.bf16.mxu0 %v1787_v6  ;;  %1363 = vmatprep.subr.bf16.mxu1 %v1709_v0 }
 0x262   :  { %583 = vmatpush1.bf16.msra.mxu0 %v1790_v7  ;;  %1364 = vmatpush3.bf16.msra.mxu1 %v1814_v15 }
 0x263   :  { %584 = vmatprep.subr.bf16.mxu0 %v1793_v8  ;;  %1365 = vmatprep.subr.bf16.mxu1 %v1709_v0 }
 0x266   :  { %585 = vmatpush1.bf16.msra.mxu0 %v1798_v10  ;;  %1366 = vmatpush3.bf16.msra.mxu1 %v1830_v19 }
 0x267   :  { %586 = vmatprep.subr.bf16.mxu0 %v1800_v11  ;;  %1367 = vmatprep.subr.bf16.mxu1 %v1709_v0 }
 0x26a   :  { %587 = vmatpush1.bf16.msra.mxu0 %v1807_v13  ;;  %1368 = vmatpush3.bf16.msra.mxu1 %v1841_v23 }
 0x26b   :  { %588 = vmatprep.subr.bf16.mxu0 %v1810_v14  ;;  %1369 = vmatprep.subr.bf16.mxu1 %v1709_v0 }
 0x26e   :  { %589 = vmatpush1.bf16.msra.mxu0 %v1823_v17  ;;  %1370 = vmatpush3.bf16.msra.mxu1 %v1849_v25 }
 0x26f   :  { %590 = vmatprep.subr.bf16.mxu0 %v1827_v18  ;;  %1371 = vmatprep.subr.bf16.mxu1 %v1709_v0 }
 0x272   :  { %591 = vmatpush1.bf16.msra.mxu0 %v1835_v21  ;;  %1372 = vmatpush3.bf16.msra.mxu1 %v1854_v26 }
 0x273   :  { %592 = vmatprep.subr.bf16.mxu0 %v1838_v22  ;;  %1373 = vmatprep.subr.bf16.mxu1 %v1709_v0 }
 0x276   :  { %593 = vmatpush1.bf16.msra.mxu0 %v1845_v24  ;;  %1374 = vmatpush3.bf16.msra.mxu1 %v1862_v27 }
 0x277   :  { %694 = vmatprep.subr.bf16.mxu0 %v1776_v2  ;;  %1379 = vmatprep.subr.bf16.mxu1 %v1709_v0 }
 0x32c   :  { %v496_v37 = vpop.f32.mrb[8].mxu0  ;;  %v537_v38 = vpop.f32.mrb[8].mxu1 }
 0x32d   :  { %v497_v39 = vadd.f32 %v496_v37, %v1906_v34  ;;  %v498_v40 = vpop.f32.mrb[9].mxu0  ;;  %v1357_v41 = vpop.f32.mrb[9].mxu1  ;;  %v538_v57 = vadd.f32 %v537_v38, %v1912_v55  ;;  %v575_v37 = vld [vmem:[#allocation2 + $0x48] sm:$0xff] }
 0x32e   :  { %v499_v42 = vadd.f32 %v498_v40, %v1908_v35  ;;  %v500_v43 = vpop.f32.mrb[10].mxu0  ;;  %v540_v44 = vpop.f32.mrb[10].mxu1 }
 0x32f   :  { %v543_v45 = vadd.f32 %v497_v39, %v459_v36  ;;  %v501_v47 = vpop.f32.mrb[11].mxu0  ;;  %v1358_v48 = vpop.f32.mrb[11].mxu1  ;;  %v800_v36 = vsel %vm799_vm5, 1, %v1710_v1 }
 0x330   :  { %v550_v50 = vadd.f32 %v499_v42, %v460_v46  ;;  %802 = vperm.xlu0 %1472, %v800_v36   ;;  %v576_v47 = vld [vmem:[#allocation2 + $0x50] sm:$0xff] }
 0x331   :  { %v1215_v49 = vmul.f32 -1.442695, %v543_v45 }
 0x332   :  { %v1216_v51 = vmul.f32 -1.442695, %v550_v50 }
 0x333   :  { %1526 = vpow2.f32 %v1215_v49 }
 0x334   :  { %1528 = vpow2.f32 %v1216_v51 }
 0x33d   :  { %v1527_v52 = vpop.eup %1526 }
 0x33e   :  { %v547_v53 = vadd.f32 1.0, %v1527_v52  ;;  %v1529_v54 = vpop.eup %1528 }
 0x33f   :  { %v554_v56 = vadd.f32 1.0, %v1529_v54 }
 0x340   :  { %1530 = vrcp.f32 %v547_v53 }
 0x341   :  { %1532 = vrcp.f32 %v554_v56 }
 0x34a   :  { %v1531_v58 = vpop.eup %1530 }
 0x34b   :  { %v557_v60 = vmul.f32 %v1531_v58, %v538_v57  ;;  %v1533_v62 = vpop.eup %1532 }
 0x34c   :  { %v560_v63 = vsub.f32 1.0, %v1533_v62  ;;  %v562_v29 = vmul.f32 %v1533_v62, %v1960_v31 }
 0x34d   :  { %v558_v61 = vadd.f32 %v557_v60, %v461_v59  ;;  %v577_v60 = vld [vmem:[#allocation2 + $0x58] sm:$0xff] }
 0x34f   :  { %1534 = vtanh.f32 %v558_v61 }
 0x359   :  { %v1535_v20 = vpop.eup %1534 }
 0x35a   :  { %v561_v28 = vmul.f32 %v1535_v20, %v560_v63 }
 0x35c   :  { %v2005_v30 = vadd.f32 %v562_v29, %v561_v28 }
 0x35e   :  { %v564_v32 = vpack.c.bf16 %v2005_v30, %v2005_v30 }
 0x360   :  { %566 = vst [vmem:[#allocation7 + $0x8] sm:$0xf] %v564_v32  ;;  %611 = vmatmul.mubr.bf16.vlgmr.msra.gmra.mrb[12].mxu0 %v564_v32  ;;  %1376 = vmatmul.mubr.bf16.vlgmr.msra.gmra.mrb[12].mxu1 %v564_v32 }
 0x361   :  { %695 = vmatpush1.bf16.msra.mxu0 %v1778_v3  ;;  %1380 = vmatpush3.bf16.msra.mxu1 %v1795_v9 }
 0x362   :  { %696 = vmatprep.subr.bf16.mxu0 %v1781_v4  ;;  %1381 = vmatprep.subr.bf16.mxu1 %v1709_v0 }
 0x363   :  { %726 = vmatprep.mubr.bf16.mxu0 %v1710_v1  ;;  %1395 = vmatprep.mubr.msk.bf16.mxu1 %vm1711_vm0, %v1709_v0 }
 0x365   :  { %697 = vmatpush1.bf16.msra.mxu0 %v1784_v5  ;;  %1382 = vmatpush3.bf16.msra.mxu1 %v1804_v12 }
 0x366   :  { %698 = vmatprep.subr.bf16.mxu0 %v1787_v6  ;;  %1383 = vmatprep.subr.bf16.mxu1 %v1709_v0 }
 0x369   :  { %699 = vmatpush1.bf16.msra.mxu0 %v1790_v7  ;;  %1384 = vmatpush3.bf16.msra.mxu1 %v1814_v15 }
 0x36a   :  { %700 = vmatprep.subr.bf16.mxu0 %v1793_v8  ;;  %1385 = vmatprep.subr.bf16.mxu1 %v1709_v0 }
 0x36d   :  { %701 = vmatpush1.bf16.msra.mxu0 %v1798_v10  ;;  %1386 = vmatpush3.bf16.msra.mxu1 %v1830_v19 }
 0x36e   :  { %702 = vmatprep.subr.bf16.mxu0 %v1800_v11  ;;  %1387 = vmatprep.subr.bf16.mxu1 %v1709_v0 }
 0x371   :  { %703 = vmatpush1.bf16.msra.mxu0 %v1807_v13  ;;  %1388 = vmatpush3.bf16.msra.mxu1 %v1841_v23 }
 0x372   :  { %704 = vmatprep.subr.bf16.mxu0 %v1810_v14  ;;  %1389 = vmatprep.subr.bf16.mxu1 %v1709_v0 }
 0x375   :  { %705 = vmatpush1.bf16.msra.mxu0 %v1823_v17  ;;  %1390 = vmatpush3.bf16.msra.mxu1 %v1849_v25 }
 0x376   :  { %706 = vmatprep.subr.bf16.mxu0 %v1827_v18  ;;  %1391 = vmatprep.subr.bf16.mxu1 %v1709_v0 }
 0x379   :  { %707 = vmatpush1.bf16.msra.mxu0 %v1835_v21  ;;  %1392 = vmatpush3.bf16.msra.mxu1 %v1854_v26 }
 0x37a   :  { %708 = vmatprep.subr.bf16.mxu0 %v1838_v22  ;;  %1393 = vmatprep.subr.bf16.mxu1 %v1709_v0 }
 0x37d   :  { %709 = vmatpush1.bf16.msra.mxu0 %v1845_v24  ;;  %1394 = vmatpush3.bf16.msra.mxu1 %v1862_v27 }
 0x37e   :  { %810 = vmatprep.subr.bf16.mxu0 %v1776_v2  ;;  %1399 = vmatprep.subr.bf16.mxu1 %v1709_v0 }
 0x433   :  { %v612_v38 = vpop.f32.mrb[12].mxu0  ;;  %v653_v39 = vpop.f32.mrb[12].mxu1 }
 0x434   :  { %v613_v40 = vadd.f32 %v612_v38, %v1906_v34  ;;  %v614_v41 = vpop.f32.mrb[13].mxu0  ;;  %v1377_v42 = vpop.f32.mrb[13].mxu1  ;;  %v654_v58 = vadd.f32 %v653_v39, %v1912_v55  ;;  %v916_v38 = vsel %vm915_vm6, 1, %v1710_v1  ;;  %v691_v39 = vld [vmem:[#allocation2 + $0x60] sm:$0xff] }
 0x435   :  { %v615_v43 = vadd.f32 %v614_v41, %v1908_v35  ;;  %v616_v44 = vpop.f32.mrb[14].mxu0  ;;  %v656_v45 = vpop.f32.mrb[14].mxu1  ;;  %918 = vperm.xlu1 %1473, %v916_v38  }
 0x436   :  { %v659_v46 = vadd.f32 %v613_v40, %v575_v37  ;;  %v617_v48 = vpop.f32.mrb[15].mxu0  ;;  %v1378_v49 = vpop.f32.mrb[15].mxu1 }
 0x437   :  { %v666_v51 = vadd.f32 %v615_v43, %v576_v47 }
 0x438   :  { %v1217_v50 = vmul.f32 -1.442695, %v659_v46 }
 0x439   :  { %v1218_v52 = vmul.f32 -1.442695, %v666_v51 }
 0x43a   :  { %1536 = vpow2.f32 %v1217_v50 }
 0x43b   :  { %1538 = vpow2.f32 %v1218_v52 }
 0x444   :  { %v1537_v53 = vpop.eup %1536 }
 0x445   :  { %v663_v54 = vadd.f32 1.0, %v1537_v53  ;;  %v1539_v56 = vpop.eup %1538 }
 0x446   :  { %v670_v57 = vadd.f32 1.0, %v1539_v56 }
 0x447   :  { %1540 = vrcp.f32 %v663_v54 }
 0x448   :  { %1542 = vrcp.f32 %v670_v57 }
 0x451   :  { %v1541_v59 = vpop.eup %1540 }
 0x452   :  { %v673_v61 = vmul.f32 %v1541_v59, %v654_v58  ;;  %v1543_v63 = vpop.eup %1542 }
 0x453   :  { %v676_v20 = vsub.f32 1.0, %v1543_v63  ;;  %v678_v32 = vmul.f32 %v1543_v63, %v2005_v30 }
 0x454   :  { %v674_v62 = vadd.f32 %v673_v61, %v577_v60  ;;  %v693_v61 = vld [vmem:[#allocation2 + $0x70] sm:$0xff] }
 0x456   :  { %1544 = vtanh.f32 %v674_v62 }
 0x460   :  { %v1545_v28 = vpop.eup %1544 }
 0x461   :  { %v677_v29 = vmul.f32 %v1545_v28, %v676_v20 }
 0x463   :  { %v2050_v36 = vadd.f32 %v678_v32, %v677_v29 }
 0x465   :  { %v680_v37 = vpack.c.bf16 %v2050_v36, %v2050_v36 }
 0x467   :  { %682 = vst [vmem:[#allocation7 + $0xc] sm:$0xf] %v680_v37  ;;  %727 = vmatmul.mubr.bf16.vlgmr.msra.gmra.mrb[16].mxu0 %v680_v37  ;;  %1396 = vmatmul.mubr.bf16.vlgmr.msra.gmra.mrb[16].mxu1 %v680_v37 }
 0x468   :  { %811 = vmatpush1.bf16.msra.mxu0 %v1778_v3  ;;  %1400 = vmatpush3.bf16.msra.mxu1 %v1795_v9 }
 0x469   :  { %812 = vmatprep.subr.bf16.mxu0 %v1781_v4  ;;  %1401 = vmatprep.subr.bf16.mxu1 %v1709_v0 }
 0x46a   :  { %842 = vmatprep.mubr.bf16.mxu0 %v1710_v1  ;;  %1415 = vmatprep.mubr.msk.bf16.mxu1 %vm1711_vm0, %v1709_v0 }
 0x46c   :  { %813 = vmatpush1.bf16.msra.mxu0 %v1784_v5  ;;  %1402 = vmatpush3.bf16.msra.mxu1 %v1804_v12 }
 0x46d   :  { %814 = vmatprep.subr.bf16.mxu0 %v1787_v6  ;;  %1403 = vmatprep.subr.bf16.mxu1 %v1709_v0 }
 0x470   :  { %815 = vmatpush1.bf16.msra.mxu0 %v1790_v7  ;;  %1404 = vmatpush3.bf16.msra.mxu1 %v1814_v15 }
 0x471   :  { %816 = vmatprep.subr.bf16.mxu0 %v1793_v8  ;;  %1405 = vmatprep.subr.bf16.mxu1 %v1709_v0 }
 0x474   :  { %817 = vmatpush1.bf16.msra.mxu0 %v1798_v10  ;;  %1406 = vmatpush3.bf16.msra.mxu1 %v1830_v19 }
 0x475   :  { %818 = vmatprep.subr.bf16.mxu0 %v1800_v11  ;;  %1407 = vmatprep.subr.bf16.mxu1 %v1709_v0 }
 0x478   :  { %819 = vmatpush1.bf16.msra.mxu0 %v1807_v13  ;;  %1408 = vmatpush3.bf16.msra.mxu1 %v1841_v23 }
 0x479   :  { %820 = vmatprep.subr.bf16.mxu0 %v1810_v14  ;;  %1409 = vmatprep.subr.bf16.mxu1 %v1709_v0 }
 0x47c   :  { %821 = vmatpush1.bf16.msra.mxu0 %v1823_v17  ;;  %1410 = vmatpush3.bf16.msra.mxu1 %v1849_v25 }
 0x47d   :  { %822 = vmatprep.subr.bf16.mxu0 %v1827_v18  ;;  %1411 = vmatprep.subr.bf16.mxu1 %v1709_v0 }
 0x480   :  { %823 = vmatpush1.bf16.msra.mxu0 %v1835_v21  ;;  %1412 = vmatpush3.bf16.msra.mxu1 %v1854_v26 }
 0x481   :  { %824 = vmatprep.subr.bf16.mxu0 %v1838_v22  ;;  %1413 = vmatprep.subr.bf16.mxu1 %v1709_v0 }
 0x484   :  { %825 = vmatpush1.bf16.msra.mxu0 %v1845_v24  ;;  %1414 = vmatpush3.bf16.msra.mxu1 %v1862_v27 }
 0x485   :  { %926 = vmatprep.subr.bf16.mxu0 %v1776_v2  ;;  %1419 = vmatprep.subr.bf16.mxu1 %v1709_v0  ;;  %v692_v2 = vld [vmem:[#allocation2 + $0x68] sm:$0xff] }
 0x53a   :  { %v728_v40 = vpop.f32.mrb[16].mxu0  ;;  %v769_v41 = vpop.f32.mrb[16].mxu1 }
 0x53b   :  { %v729_v42 = vadd.f32 %v728_v40, %v1906_v34  ;;  %v730_v43 = vpop.f32.mrb[17].mxu0  ;;  %v1397_v44 = vpop.f32.mrb[17].mxu1  ;;  %v770_v59 = vadd.f32 %v769_v41, %v1912_v55 }
 0x53c   :  { %v731_v45 = vadd.f32 %v730_v43, %v1908_v35  ;;  %v732_v46 = vpop.f32.mrb[18].mxu0  ;;  %v772_v47 = vpop.f32.mrb[18].mxu1  ;;  %v809_v44 = vld [vmem:[#allocation2 + $0x88] sm:$0xff] }
 0x53d   :  { %v775_v48 = vadd.f32 %v729_v42, %v691_v39  ;;  %v733_v49 = vpop.f32.mrb[19].mxu0  ;;  %v1398_v50 = vpop.f32.mrb[19].mxu1 }
 0x53e   :  { %v782_v52 = vadd.f32 %v731_v45, %v692_v2 }
 0x53f   :  { %v1219_v51 = vmul.f32 -1.442695, %v775_v48 }
 0x540   :  { %v1220_v53 = vmul.f32 -1.442695, %v782_v52 }
 0x541   :  { %1546 = vpow2.f32 %v1219_v51 }
 0x542   :  { %1548 = vpow2.f32 %v1220_v53  ;;  %v1587_v53 = vld [vmem:[#allocation5] ss:$12 sps:$4 sm:$0xff]  }
 0x54b   :  { %v1547_v54 = vpop.eup %1546 }
 0x54c   :  { %v779_v56 = vadd.f32 1.0, %v1547_v54  ;;  %v1549_v57 = vpop.eup %1548  ;;  %v1588_v54 = vld [vmem:[#allocation5 + $0x8] ss:$12 sps:$4 sm:$0xff]  }
 0x54d   :  { %v786_v58 = vadd.f32 1.0, %v1549_v57  ;;  %v1590_v57 = vld [vmem:[#allocation5 + $0x18] ss:$12 sps:$4 sm:$0xff]  }
 0x54e   :  { %1550 = vrcp.f32 %v779_v56  ;;  %v1589_v56 = vld [vmem:[#allocation5 + $0x1c] ss:$12 sps:$4 sm:$0xff]  }
 0x54f   :  { %1552 = vrcp.f32 %v786_v58  ;;  %v1591_v58 = vld [vmem:[#allocation5 + $0x20] ss:$12 sps:$4 sm:$0xff]  }
 0x558   :  { %v1551_v60 = vpop.eup %1550 }
 0x559   :  { %v789_v62 = vmul.f32 %v1551_v60, %v770_v59  ;;  %v1553_v20 = vpop.eup %1552  ;;  %v1592_v59 = vld [vmem:[#allocation5 + $0x34] ss:$12 sps:$4 sm:$0xff]   ;;  %v1593_v60 = vld [vmem:[#allocation5 + $0x30] ss:$12 sps:$4 sm:$0xff]  }
 0x55a   :  { %v792_v28 = vsub.f32 1.0, %v1553_v20  ;;  %v794_v37 = vmul.f32 %v1553_v20, %v2050_v36  ;;  %v1597_v20 = vld [vmem:[#allocation5 + $0x50] ss:$12 sps:$4 sm:$0xff]  }
 0x55b   :  { %v790_v63 = vadd.f32 %v789_v62, %v693_v61  ;;  %v1594_v61 = vld [vmem:[#allocation5 + $0x38] ss:$12 sps:$4 sm:$0xff]  }
 0x55c   :  { %v1595_v62 = vld [vmem:[#allocation5 + $0x4c] ss:$12 sps:$4 sm:$0xff]  }
 0x55d   :  { %1554 = vtanh.f32 %v790_v63  ;;  %v1596_v63 = vld [vmem:[#allocation5 + $0x48] ss:$12 sps:$4 sm:$0xff]  }
 0x567   :  { %v1555_v29 = vpop.eup %1554 }
 0x568   :  { %v793_v32 = vmul.f32 %v1555_v29, %v792_v28  ;;  %v1598_v28 = vld [vmem:[#allocation5 + $0x64] ss:$12 sps:$4 sm:$0xff]   ;;  %v1599_v29 = vld [vmem:[#allocation5 + $0x60] ss:$12 sps:$4 sm:$0xff]  }
 0x56a   :  { %v2095_v38 = vadd.f32 %v794_v37, %v793_v32  ;;  %v1600_v32 = vld [vmem:[#allocation5 + $0x7c] ss:$12 sps:$4 sm:$0xff]   ;;  %v1601_v37 = vld [vmem:[#allocation5 + $0x78] ss:$12 sps:$4 sm:$0xff]  }
 0x56c   :  { %v796_v39 = vpack.c.bf16 %v2095_v38, %v2095_v38 }
 0x56e   :  { %798 = vst [vmem:[#allocation7 + $0x10] sm:$0xf] %v796_v39  ;;  %843 = vmatmul.mubr.bf16.vlgmr.msra.gmra.mrb[20].mxu0 %v796_v39  ;;  %1416 = vmatmul.mubr.bf16.vlgmr.msra.gmra.mrb[20].mxu1 %v796_v39  ;;  %v1602_v39 = vld [vmem:[#allocation5 + $0x94] ss:$12 sps:$4 sm:$0xff]  }
 0x56f   :  { %927 = vmatpush1.bf16.msra.mxu0 %v1778_v3  ;;  %1420 = vmatpush3.bf16.msra.mxu1 %v1795_v9  ;;  %v1586_v3 = vld [vmem:[#allocation5 + $0x4] ss:$12 sps:$4 sm:$0xff]  }
 0x570   :  { %928 = vmatprep.subr.bf16.mxu0 %v1781_v4  ;;  %1421 = vmatprep.subr.bf16.mxu1 %v1709_v0  ;;  %v1032_v4 = vsel %vm1031_vm7, 1, %v1710_v1 }
 0x571   :  { %958 = vmatprep.mubr.bf16.mxu0 %v1710_v1  ;;  %1435 = vmatprep.mubr.msk.bf16.mxu1 %vm1711_vm0, %v1709_v0 }
 0x572   :  { %1034 = vperm.xlu0 %1472, %v1032_v4   ;;  %v1604_v4 = vld [vmem:[#allocation5 + $0xac] ss:$12 sps:$4 sm:$0xff]  }
 0x573   :  { %929 = vmatpush1.bf16.msra.mxu0 %v1784_v5  ;;  %1422 = vmatpush3.bf16.msra.mxu1 %v1804_v12  ;;  %v807_v5 = vld [vmem:[#allocation2 + $0x78] sm:$0xff] }
 0x574   :  { %930 = vmatprep.subr.bf16.mxu0 %v1787_v6  ;;  %1423 = vmatprep.subr.bf16.mxu1 %v1709_v0 }
 0x577   :  { %931 = vmatpush1.bf16.msra.mxu0 %v1790_v7  ;;  %1424 = vmatpush3.bf16.msra.mxu1 %v1814_v15  ;;  %v808_v15 = vld [vmem:[#allocation2 + $0x80] sm:$0xff] }
 0x578   :  { %932 = vmatprep.subr.bf16.mxu0 %v1793_v8  ;;  %1425 = vmatprep.subr.bf16.mxu1 %v1709_v0 }
 0x57b   :  { %933 = vmatpush1.bf16.msra.mxu0 %v1798_v10  ;;  %1426 = vmatpush3.bf16.msra.mxu1 %v1830_v19 }
 0x57c   :  { %934 = vmatprep.subr.bf16.mxu0 %v1800_v11  ;;  %1427 = vmatprep.subr.bf16.mxu1 %v1709_v0 }
 0x57f   :  { %935 = vmatpush1.bf16.msra.mxu0 %v1807_v13  ;;  %1428 = vmatpush3.bf16.msra.mxu1 %v1841_v23 }
 0x580   :  { %936 = vmatprep.subr.bf16.mxu0 %v1810_v14  ;;  %1429 = vmatprep.subr.bf16.mxu1 %v1709_v0 }
 0x583   :  { %937 = vmatpush1.bf16.msra.mxu0 %v1823_v17  ;;  %1430 = vmatpush3.bf16.msra.mxu1 %v1849_v25 }
 0x584   :  { %938 = vmatprep.subr.bf16.mxu0 %v1827_v18  ;;  %1431 = vmatprep.subr.bf16.mxu1 %v1709_v0 }
 0x587   :  { %939 = vmatpush1.bf16.msra.mxu0 %v1835_v21  ;;  %1432 = vmatpush3.bf16.msra.mxu1 %v1854_v26 }
 0x588   :  { %940 = vmatprep.subr.bf16.mxu0 %v1838_v22  ;;  %1433 = vmatprep.subr.bf16.mxu1 %v1709_v0 }
 0x58b   :  { %941 = vmatpush1.bf16.msra.mxu0 %v1845_v24  ;;  %1434 = vmatpush3.bf16.msra.mxu1 %v1862_v27 }
 0x58c   :  { %1042 = vmatprep.subr.bf16.mxu0 %v1586_v3  ;;  %1439 = vmatprep.subr.bf16.mxu1 %v1709_v0  ;;  %v1603_v3 = vld [vmem:[#allocation5 + $0x90] ss:$12 sps:$4 sm:$0xff]  }
 0x641   :  { %v844_v6 = vpop.f32.mrb[20].mxu0  ;;  %v885_v7 = vpop.f32.mrb[20].mxu1 }
 0x642   :  { %v845_v8 = vadd.f32 %v844_v6, %v1906_v34  ;;  %v846_v9 = vpop.f32.mrb[21].mxu0  ;;  %v1417_v10 = vpop.f32.mrb[21].mxu1  ;;  %v886_v42 = vadd.f32 %v885_v7, %v1912_v55  ;;  %v923_v6 = vld [vmem:[#allocation2 + $0x90] sm:$0xff] }
 0x643   :  { %v847_v11 = vadd.f32 %v846_v9, %v1908_v35  ;;  %v848_v12 = vpop.f32.mrb[22].mxu0  ;;  %v888_v13 = vpop.f32.mrb[22].mxu1 }
 0x644   :  { %v891_v14 = vadd.f32 %v845_v8, %v807_v5  ;;  %v849_v17 = vpop.f32.mrb[23].mxu0  ;;  %v1418_v18 = vpop.f32.mrb[23].mxu1  ;;  %v924_v13 = vld [vmem:[#allocation2 + $0x98] sm:$0xff] }
 0x645   :  { %v898_v16 = vadd.f32 %v847_v11, %v808_v15 }
 0x646   :  { %v1221_v19 = vmul.f32 -1.442695, %v891_v14 }
 0x647   :  { %v1222_v21 = vmul.f32 -1.442695, %v898_v16 }
 0x648   :  { %1556 = vpow2.f32 %v1221_v19 }
 0x649   :  { %1558 = vpow2.f32 %v1222_v21 }
 0x652   :  { %v1557_v22 = vpop.eup %1556 }
 0x653   :  { %v895_v24 = vadd.f32 1.0, %v1557_v22  ;;  %v1559_v40 = vpop.eup %1558 }
 0x654   :  { %v902_v41 = vadd.f32 1.0, %v1559_v40 }
 0x655   :  { %1560 = vrcp.f32 %v895_v24 }
 0x656   :  { %1562 = vrcp.f32 %v902_v41  ;;  %v925_v41 = vld [vmem:[#allocation2 + $0xa0] sm:$0xff] }
 0x65f   :  { %v1561_v43 = vpop.eup %1560 }
 0x660   :  { %v905_v45 = vmul.f32 %v1561_v43, %v886_v42  ;;  %v1563_v47 = vpop.eup %1562 }
 0x661   :  { %v908_v48 = vsub.f32 1.0, %v1563_v47  ;;  %v910_v50 = vmul.f32 %v1563_v47, %v2095_v38 }
 0x662   :  { %v906_v46 = vadd.f32 %v905_v45, %v809_v44 }
 0x664   :  { %1564 = vtanh.f32 %v906_v46 }
 0x66e   :  { %v1565_v2 = vpop.eup %1564 }
 0x66f   :  { %v909_v49 = vmul.f32 %v1565_v2, %v908_v48 }
 0x671   :  { %v2139_v51 = vadd.f32 %v910_v50, %v909_v49  ;;  %v1039_v50 = vld [vmem:[#allocation2 + $0xa8] sm:$0xff] }
 0x673   :  { %v912_v52 = vpack.c.bf16 %v2139_v51, %v2139_v51 }
 0x675   :  { %914 = vst [vmem:[#allocation7 + $0x14] sm:$0xf] %v912_v52  ;;  %959 = vmatmul.mubr.bf16.vlgmr.msra.gmra.mrb[24].mxu0 %v912_v52  ;;  %1436 = vmatmul.mubr.bf16.vlgmr.msra.gmra.mrb[24].mxu1 %v912_v52 }
 0x676   :  { %1043 = vmatpush1.bf16.msra.mxu0 %v1587_v53  ;;  %1440 = vmatpush3.bf16.msra.mxu1 %v1588_v54 }
 0x677   :  { %1044 = vmatprep.subr.bf16.mxu0 %v1589_v56  ;;  %1441 = vmatprep.subr.bf16.mxu1 %v1709_v0 }
 0x678   :  { %1074 = vmatprep.mubr.bf16.mxu0 %v1710_v1  ;;  %1455 = vmatprep.mubr.msk.bf16.mxu1 %vm1711_vm0, %v1709_v0 }
 0x67a   :  { %1045 = vmatpush1.bf16.msra.mxu0 %v1590_v57  ;;  %1442 = vmatpush3.bf16.msra.mxu1 %v1591_v58 }
 0x67b   :  { %1046 = vmatprep.subr.bf16.mxu0 %v1592_v59  ;;  %1443 = vmatprep.subr.bf16.mxu1 %v1709_v0 }
 0x67e   :  { %1047 = vmatpush1.bf16.msra.mxu0 %v1593_v60  ;;  %1444 = vmatpush3.bf16.msra.mxu1 %v1594_v61 }
 0x67f   :  { %1048 = vmatprep.subr.bf16.mxu0 %v1595_v62  ;;  %1445 = vmatprep.subr.bf16.mxu1 %v1709_v0  ;;  %v1040_v62 = vld [vmem:[#allocation2 + $0xb0] sm:$0xff] }
 0x682   :  { %1049 = vmatpush1.bf16.msra.mxu0 %v1596_v63  ;;  %1446 = vmatpush3.bf16.msra.mxu1 %v1597_v20 }
 0x683   :  { %1050 = vmatprep.subr.bf16.mxu0 %v1598_v28  ;;  %1447 = vmatprep.subr.bf16.mxu1 %v1709_v0 }
 0x686   :  { %1051 = vmatpush1.bf16.msra.mxu0 %v1599_v29  ;;  %1448 = vmatpush3.bf16.msra.mxu1 %v1841_v23  ;;  %v1605_v23 = vld [vmem:[#allocation5 + $0xa8] ss:$12 sps:$4 sm:$0xff]  }
 0x687   :  { %1052 = vmatprep.subr.bf16.mxu0 %v1600_v32  ;;  %1449 = vmatprep.subr.bf16.mxu1 %v1709_v0 }
 0x68a   :  { %1053 = vmatpush1.bf16.msra.mxu0 %v1601_v37  ;;  %1450 = vmatpush3.bf16.msra.mxu1 %v1849_v25  ;;  %v1606_v25 = vld [vmem:[%s2212_s1] sm:$0xff]  ;;  %s1712_s1 = smov [#allocation7]  }
 0x68b   :  { %1054 = vmatprep.subr.bf16.mxu0 %v1602_v39  ;;  %1451 = vmatprep.subr.bf16.mxu1 %v1709_v0  ;;  %vm1147_vm8 = vcmp.eq.s32.totalorder %v1606_v25, 8  ;;  %v339_v25 = vpop.permute.xlu0 %338  ;;  %s1160_s24 = sshll.u32 %s1712_s1, 4  ;;  %s2180_s24 = int_to_ptr.vmem [resolvable:$true] %s1160_s24 }
 0x68c   :  { %v1148_v5 = vsel %vm1147_vm8, 1, %v1710_v1  ;;  %vm340_vm9 = vcmp.eq.s32.totalorder %v339_v25, 1 }
 0x68d   :  { %1150 = vperm.xlu1 %1473, %v1148_v5  }
 0x68e   :  { %1055 = vmatpush1.bf16.msra.mxu0 %v1603_v3  ;;  %1452 = vmatpush3.bf16.msra.mxu1 %v1854_v26 }
 0x68f   :  { %1056 = vmatprep.subr.bf16.mxu0 %v1604_v4  ;;  %1453 = vmatprep.subr.bf16.mxu1 %v1709_v0 }
 0x692   :  { %1057 = vmatpush1.bf16.msra.mxu0 %v1605_v23  ;;  %1454 = vmatpush3.bf16.msra.mxu1 %v1862_v27 }
 0x748   :  { %v960_v7 = vpop.f32.mrb[24].mxu0  ;;  %v1001_v8 = vpop.f32.mrb[24].mxu1 }
 0x749   :  { %v961_v26 = vadd.f32 %v960_v7, %v1906_v34  ;;  %v962_v9 = vpop.f32.mrb[25].mxu0  ;;  %v1437_v10 = vpop.f32.mrb[25].mxu1  ;;  %v1002_v24 = vadd.f32 %v1001_v8, %v1912_v55 }
 0x74a   :  { %v963_v0 = vadd.f32 %v962_v9, %v1908_v35  ;;  %v964_v11 = vpop.f32.mrb[26].mxu0  ;;  %v1004_v12 = vpop.f32.mrb[26].mxu1 }
 0x74b   :  { %v1007_v27 = vadd.f32 %v961_v26, %v923_v6  ;;  %v965_v14 = vpop.f32.mrb[27].mxu0  ;;  %v1438_v15 = vpop.f32.mrb[27].mxu1  ;;  %v341_v11 = vsel %vm340_vm9, %v1915_v33, 0.0 }
 0x74c   :  { %v1014_v18 = vadd.f32 %v963_v0, %v924_v13  ;;  %v571_v7 = vpop.permute.xlu1 %570  ;;  %v455_v8 = vpop.permute.xlu0 %454 }
 0x74d   :  { %v1223_v17 = vmul.f32 -1.442695, %v1007_v27  ;;  %vm456_vm10 = vcmp.eq.s32.totalorder %v455_v8, 1  ;;  %vm572_vm11 = vcmp.eq.s32.totalorder %v571_v7, 1 }
 0x74e   :  { %v1224_v1 = vmul.f32 -1.442695, %v1014_v18  ;;  %v457_v12 = vsel %vm456_vm10, %v1960_v31, %v341_v11 }
 0x74f   :  { %1566 = vpow2.f32 %v1223_v17  ;;  %v573_v14 = vsel %vm572_vm11, %v2005_v30, %v457_v12 }
 0x750   :  { %1568 = vpow2.f32 %v1224_v1  ;;  %v687_v26 = vpop.permute.xlu1 %686  ;;  %v803_v9 = vpop.permute.xlu0 %802 }
 0x751   :  { %vm688_vm12 = vcmp.eq.s32.totalorder %v687_v26, 1  ;;  %vm804_vm13 = vcmp.eq.s32.totalorder %v803_v9, 1 }
 0x752   :  { %v689_v15 = vsel %vm688_vm12, %v2050_v36, %v573_v14 }
 0x753   :  { %v805_v33 = vsel %vm804_vm13, %v2095_v38, %v689_v15 }
 0x754   :  { %v919_v0 = vpop.permute.xlu1 %918 }
 0x755   :  { %vm920_vm14 = vcmp.eq.s32.totalorder %v919_v0, 1 }
 0x756   :  { %v921_v31 = vsel %vm920_vm14, %v2139_v51, %v805_v33 }
 0x758   :  { %v1151_v17 = vpop.permute.xlu1 %1150 }
 0x759   :  { %v1567_v19 = vpop.eup %1566  ;;  %vm1152_vm0 = vcmp.eq.s32.totalorder %v1151_v17, 1 }
 0x75a   :  { %v1011_v16 = vadd.f32 1.0, %v1567_v19  ;;  %v1569_v21 = vpop.eup %1568 }
 0x75b   :  { %v1018_v22 = vadd.f32 1.0, %v1569_v21 }
 0x75c   :  { %1570 = vrcp.f32 %v1011_v16 }
 0x75d   :  { %1572 = vrcp.f32 %v1018_v22 }
 0x766   :  { %v1571_v40 = vpop.eup %1570 }
 0x767   :  { %v1021_v42 = vmul.f32 %v1571_v40, %v1002_v24  ;;  %v1573_v44 = vpop.eup %1572 }
 0x768   :  { %v1024_v45 = vsub.f32 1.0, %v1573_v44  ;;  %v1026_v48 = vmul.f32 %v1573_v44, %v2139_v51 }
 0x769   :  { %v1022_v43 = vadd.f32 %v1021_v42, %v925_v41 }
 0x76b   :  { %1574 = vtanh.f32 %v1022_v43 }
 0x775   :  { %v1575_v46 = vpop.eup %1574 }
 0x776   :  { %v1025_v47 = vmul.f32 %v1575_v46, %v1024_v45 }
 0x778   :  { %v2165_v2 = vadd.f32 %v1026_v48, %v1025_v47 }
 0x77a   :  { %v1028_v49 = vpack.c.bf16 %v2165_v2, %v2165_v2 }
 0x77c   :  { %1030 = vst [vmem:[#allocation7 + $0x18] sm:$0xf] %v1028_v49  ;;  %1075 = vmatmul.mubr.bf16.vlgmr.msra.gmra.mrb[28].mxu0 %v1028_v49  ;;  %1456 = vmatmul.mubr.bf16.vlgmr.msra.gmra.mrb[28].mxu1 %v1028_v49 }
 0x84f   :  { %v1076_v52 = vpop.f32.mrb[28].mxu0  ;;  %v1117_v53 = vpop.f32.mrb[28].mxu1 }
 0x850   :  { %v1077_v54 = vadd.f32 %v1076_v52, %v1906_v34  ;;  %v1078_v56 = vpop.f32.mrb[29].mxu0  ;;  %v1457_v57 = vpop.f32.mrb[29].mxu1  ;;  %v1118_v4 = vadd.f32 %v1117_v53, %v1912_v55 }
 0x851   :  { %v1079_v58 = vadd.f32 %v1078_v56, %v1908_v35  ;;  %v1080_v59 = vpop.f32.mrb[30].mxu0  ;;  %v1120_v60 = vpop.f32.mrb[30].mxu1  ;;  %v1041_v35 = vld [vmem:[#allocation2 + $0xb8] sm:$0xff] }
 0x852   :  { %v1123_v61 = vadd.f32 %v1077_v54, %v1039_v50  ;;  %v1081_v63 = vpop.f32.mrb[31].mxu0  ;;  %v1458_v20 = vpop.f32.mrb[31].mxu1 }
 0x853   :  { %v1130_v29 = vadd.f32 %v1079_v58, %v1040_v62  ;;  %v1035_v55 = vpop.permute.xlu0 %1034 }
 0x854   :  { %v1225_v28 = vmul.f32 -1.442695, %v1123_v61  ;;  %vm1036_vm15 = vcmp.eq.s32.totalorder %v1035_v55, 1 }
 0x855   :  { %v1226_v32 = vmul.f32 -1.442695, %v1130_v29  ;;  %v1037_v16 = vsel %vm1036_vm15, %v2165_v2, %v921_v31 }
 0x856   :  { %1576 = vpow2.f32 %v1225_v28 }
 0x857   :  { %1578 = vpow2.f32 %v1226_v32 }
 0x860   :  { %v1577_v37 = vpop.eup %1576 }
 0x861   :  { %v1127_v39 = vadd.f32 1.0, %v1577_v37  ;;  %v1579_v3 = vpop.eup %1578 }
 0x862   :  { %v1134_v34 = vadd.f32 1.0, %v1579_v3 }
 0x863   :  { %1580 = vrcp.f32 %v1127_v39 }
 0x864   :  { %1582 = vrcp.f32 %v1134_v34 }
 0x86d   :  { %v1581_v23 = vpop.eup %1580 }
 0x86e   :  { %v1137_v5 = vmul.f32 %v1581_v23, %v1118_v4  ;;  %v1583_v10 = vpop.eup %1582 }
 0x86f   :  { %v1140_v27 = vsub.f32 1.0, %v1583_v10  ;;  %v1142_v1 = vmul.f32 %v1583_v10, %v2165_v2 }
 0x870   :  { %v1138_v6 = vadd.f32 %v1137_v5, %v1041_v35 }
 0x872   :  { %1584 = vtanh.f32 %v1138_v6 }
 0x87c   :  { %v1585_v13 = vpop.eup %1584 }
 0x87d   :  { %v1141_v18 = vmul.f32 %v1585_v13, %v1140_v27 }
 0x87f   :  { %v1143_v19 = vadd.f32 %v1142_v1, %v1141_v18 }
 0x881   :  { %v1144_v30 = vpack.c.bf16 %v1143_v19, %v1143_v19  ;;  %v1153_v36 = vsel %vm1152_vm0, %v1143_v19, %v1037_v16 }
 0x882   :  { %1154 = vst [vmem:[#allocation8] sm:$0xff] %v1153_v36 }
 0x883   :  { %1146 = vst [vmem:[#allocation7 + $0x1c] sm:$0xf] %v1144_v30 }
 0x884   :  { %1662 = shalt.err (!%p1659_p6)
}
 0x885   :  { %s1663_s30 = scalar_lea.hbm %s2216_s5, 128 }
 0x886   :  { %p1664_p7 = scmp.ne.s32.totalorder %s2216_s5, %s1663_s30  ;;  %p1667_p8 = scmp.lt.u32.totalorder %s1663_s30, %s2216_s5 }
 0x888   :  { %p1669_p9 = pnand %p1667_p8, %p1664_p7 }
 0x88a   :  { %1672 = shalt.err (!%p1669_p9)
}
 0x88b   :  { %1176 = dma.vmem_to_hbm [thread:$0]  %s1174_s26, 128, %s2216_s5, [#allocation9]  }
 0x88c   :  { %s1673_s12 = scalar_lea.vmem %s2180_s24, 512  ;;  %p1678_p11 = scmp.lt.s32.totalorder %s2180_s24, %s2180_s24 }
 0x88d   :  { %p1674_p10 = scmp.ne.s32.totalorder %s2180_s24, %s1673_s12  ;;  %p1679_p12 = scmp.lt.s32.totalorder %s1673_s12, %s1673_s12 }
 0x88f   :  { %p1680_p13 = por %p1679_p12, %p1678_p11 }
 0x891   :  { %p1681_p0 = pnand %p1680_p13, %p1674_p10 }
 0x893   :  { %1684 = shalt.err (!%p1681_p0)
}
 0x894   :  { %s1685_s15 = scalar_lea.hbm %s2215_s4, 512 }
 0x895   :  { %p1686_p1 = scmp.ne.s32.totalorder %s2215_s4, %s1685_s15  ;;  %p1689_p2 = scmp.lt.u32.totalorder %s1685_s15, %s2215_s4 }
 0x897   :  { %p1691_p3 = pnand %p1689_p2, %p1686_p1 }
 0x899   :  { %1694 = shalt.err (!%p1691_p3)
}
 0x89a   :  { %s1714_s5 = smov 64   ;;  %s1715_s19 = smov 4  }
 0x89b   :  { %1166 = dma.vmem_to_hbm [thread:$0]  %s2180_s24, 512, %s2215_s4, [#allocation4], %s1714_s5, %s1714_s5, %s1715_s19  }
 0x89c   :  { %1699 = dma.done.wait [#allocation4], 512  }
 0x89d   :  { %1700 = vsyncadd [#allocation4], 4294966784 }
 0x89e   :  { %1701 = dma.done.wait [#allocation9], 128  }
 0x89f   :  { %1702 = vsyncadd [#allocation9], 4294967168 }
 0x8a0   :  { %1183 = vsyncpa [#allocation3], 1 }
 0x8a1   :  { %1184 = vsyncpa [#allocation6], 1 }
 0x8a2   :  { %1185 = vsyncpa [#allocation4], 1 }
 0x8a3   :  { %1186 = vsyncpa [#allocation9], 1 }

</bundles_post_ra>
